<compile_context>
chip_gen: v7x
topology: tpu7x:2x2x1
jax: 0.10.0
libtpu: 0.0.40
codegen_flags: <defaults>
</compile_context>

<pallas_src>
import jax
import jax.numpy as jnp
from jax.experimental import pallas as pl
from jax.experimental.pallas import tpu as pltpu


def _comp_layer_kernel(src_ref, relid_ref, dst_ref,       # [1, tE] int32 lane-dense index rows
                       ent_ref, entT_ref, relT_ref, w_ref, # resident f32 tables
                       out_ref,                            # [N, H] output (written at last step)
                       m_sc, l_sc, acc_sc):                # online-softmax scratch
    e_step = pl.program_id(0)
    n_steps = pl.num_programs(0)

    @pl.when(e_step == 0)
    def _init():
        m_sc[...] = jnp.full_like(m_sc, -1e30)
        l_sc[...] = jnp.zeros_like(l_sc)
        acc_sc[...] = jnp.zeros_like(acc_sc)

    ent = ent_ref[...]                        # [N, H]  f32
    ent_t = entT_ref[...]                     # [H, N]  f32 (host-transposed resident)
    rel_t = relT_ref[...]                     # [H, Rp] f32 (host-transposed, row-padded)
    src_row = src_ref[...]                    # [1, tE] int32
    rel_row = relid_ref[...]                  # [1, tE] int32
    dst_row = dst_ref[...]                    # [1, tE] int32 (-1 => padded edge)

    H, N = ent_t.shape
    Rp = rel_t.shape[1]
    tE = src_row.shape[1]
    one = jnp.float32(1.0)
    zero = jnp.float32(0.0)

    # ---- in-kernel gathers: exact {0,1} one-hot matmuls on the MXU --------------------
    # Lane-dense one-hots ([*, tE]) against the lane-dense index rows; both gathers and
    # e_dot_v below are standard (K,M)@(M,N) contractions -> no per-tile transposes.
    src_oh = jnp.where(
        jax.lax.broadcasted_iota(jnp.int32, (N, tE), 0) == src_row, one, zero)    # [N, tE]
    rel_oh = jnp.where(
        jax.lax.broadcasted_iota(jnp.int32, (Rp, tE), 0) == rel_row, one, zero)   # [Rp, tE]
    src_emb_t = jnp.dot(ent_t, src_oh, preferred_element_type=jnp.float32)         # [H, tE]
    edge_emb_t = jnp.dot(rel_t, rel_oh, preferred_element_type=jnp.float32)        # [H, tE]

    # ---- u_mul_e (comp_emb, transposed [H, tE] layout) --------------------------------
    comp_t = src_emb_t * edge_emb_t                                                # [H, tE]

    # ---- e_dot_v: raw[v, e] = <ent_v, comp_e>; only (dst_e, e) entries are ever used --
    raw = jnp.dot(ent, comp_t, preferred_element_type=jnp.float32)                 # [N, tE]

    # dst one-hot mask built on the fly (never materialized in HBM)
    mask = jax.lax.broadcasted_iota(jnp.int32, (N, tE), 0) == dst_row              # [N, tE]
    neg = jnp.float32(-1e30)
    scores = jnp.where(mask, raw, neg)

    # ---- online (flash-style) edge softmax grouped by dst -----------------------------
    m_prev = m_sc[...]                                                             # [N, 1]
    m_new = jnp.maximum(m_prev, jnp.max(scores, axis=-1, keepdims=True))
    alpha = jnp.exp(m_prev - m_new)                                                # [N, 1]
    # NOTE: exp() is intentionally evaluated on the -1e30-masked entries (and on all-masked
    # rows, where scores - m_new == 0); the where() below is what keeps this correct.
    # Do NOT "simplify" the guard away.
    p = jnp.where(mask, jnp.exp(scores - m_new), zero)                             # [N, tE]
    l_sc[...] = alpha * l_sc[...] + jnp.sum(p, axis=-1, keepdims=True)
    # Aggregation: bf16 MXU operands (safe: p in [0,1], comp values O(1)), f32 accumulation.
    acc_sc[...] = alpha * acc_sc[...] + jax.lax.dot_general(
        p.astype(jnp.bfloat16), comp_t.astype(jnp.bfloat16),
        (((1,), (1,)), ((), ())), preferred_element_type=jnp.float32)              # [N, H]
    m_sc[...] = m_new

    # ---- finalize: normalize, project, BatchNorm1d (batch stats), tanh -----------------
    @pl.when(e_step == n_steps - 1)
    def _finalize():
        l = l_sc[...]
        denom = jnp.where(l > zero, l, one)            # nodes with no in-edges -> 0 vector
        neigh = acc_sc[...] / denom                    # exact division (no approx recip)
        h = jnp.dot(neigh, w_ref[...], preferred_element_type=jnp.float32)          # [N, H]
        mean = jnp.mean(h, axis=0, keepdims=True)
        centered = h - mean
        var = jnp.mean(centered * centered, axis=0, keepdims=True)   # two-pass variance
        out_ref[...] = jnp.tanh(
            centered * jax.lax.rsqrt(var + jnp.float32(1e-5))).astype(out_ref.dtype)


def comp_layer_forward(ent_emb, rel_emb, src, dst, rel_id, neigh_w, *, tile_e=512):
    """ent_emb [N,H] f32, rel_emb [R,H] f32, src/dst/rel_id [E] int, neigh_w [H,H] f32."""
    assert tile_e % 128 == 0, "edge tile must be lane-aligned (multiple of 128)"
    N, H = ent_emb.shape
    R = rel_emb.shape[0]
    E = src.shape[0]
    f32 = jnp.float32

    # Pad the relation table to a lane-aligned row count; padded rows are never indexed.
    Rp = ((R + 127) // 128) * 128
    rel_pad = jnp.pad(rel_emb.astype(f32), ((0, Rp - R), (0, 0)))

    num_tiles = int(pl.cdiv(E, tile_e))
    e_pad = num_tiles * tile_e
    pad = e_pad - E
    # Lane-dense [1, e_pad] index rows (NOT [e_pad, 1] columns): avoids ~128x lane padding
    # of the int32 index DMA/VMEM blocks.
    # Padded edges: src/rel -> 0 (harmless, masked out), dst -> -1 (matches no node).
    src_row = jnp.pad(src.astype(jnp.int32), (0, pad)).reshape(1, e_pad)
    rel_row = jnp.pad(rel_id.astype(jnp.int32), (0, pad)).reshape(1, e_pad)
    dst_row = jnp.pad(dst.astype(jnp.int32), (0, pad), constant_values=-1).reshape(1, e_pad)

    ent_f = ent_emb.astype(f32)
    ent_t = ent_f.T                    # [H, N]  host-side transpose (one-time, outside kernel)
    rel_t = rel_pad.T                  # [H, Rp]

    grid_spec = pltpu.PrefetchScalarGridSpec(
        num_scalar_prefetch=0,
        grid=(num_tiles,),
        in_specs=[
            pl.BlockSpec((1, tile_e), lambda e: (0, e)),    # src indices   (per edge tile)
            pl.BlockSpec((1, tile_e), lambda e: (0, e)),    # rel indices   (per edge tile)
            pl.BlockSpec((1, tile_e), lambda e: (0, e)),    # dst indices   (per edge tile)
            pl.BlockSpec((N, H), lambda e: (0, 0)),         # ent_emb       (resident)
            pl.BlockSpec((H, N), lambda e: (0, 0)),         # ent_emb^T     (resident)
            pl.BlockSpec((H, Rp), lambda e: (0, 0)),        # rel_emb^T     (resident, padded)
            pl.BlockSpec((H, H), lambda e: (0, 0)),         # neigh_w       (resident)
        ],
        out_specs=pl.BlockSpec((N, H), lambda e: (0, 0)),
        scratch_shapes=[
            pltpu.VMEM((N, 1), f32),    # running max m
            pltpu.VMEM((N, 1), f32),    # running sum l
            pltpu.VMEM((N, H), f32),    # weighted-sum accumulator
        ],
    )

    return pl.pallas_call(
        _comp_layer_kernel,
        out_shape=jax.ShapeDtypeStruct((N, H), f32),
        grid_spec=grid_spec,
        compiler_params=pltpu.CompilerParams(
            dimension_semantics=("arbitrary",),        # E axis is a sequential reduction
            vmem_limit_bytes=32 * 1024 * 1024,         # explicit cap (v5e default is 16 MiB)
        ),
    )(src_row, rel_row, dst_row, ent_f, ent_t, rel_t, neigh_w.astype(f32))


def comp_layer_reference(ent_emb, rel_emb, src, dst, rel_id, neigh_w):
    """Pure-JAX reference mirroring the DGL/PyTorch forward."""
    N = ent_emb.shape[0]
    comp = ent_emb[src] * rel_emb[rel_id]                       # [E,H]
    norm = jnp.sum(comp * ent_emb[dst], axis=-1)                # [E]
    m = jax.ops.segment_max(norm, dst, num_segments=N)
    m = jnp.where(jnp.isfinite(m), m, 0.0)
    p = jnp.exp(norm - m[dst])
    denom = jax.ops.segment_sum(p, dst, num_segments=N)
    w_e = p / denom[dst]
    neigh = jax.ops.segment_sum(comp * w_e[:, None], dst, num_segments=N)
    h = neigh @ neigh_w
    mean = jnp.mean(h, axis=0, keepdims=True)
    var = jnp.mean((h - mean) ** 2, axis=0, keepdims=True)
    return jnp.tanh((h - mean) / jnp.sqrt(var + 1e-5))


if __name__ == "__main__":
    key = jax.random.PRNGKey(0)
    k1, k2, k3, k4, k5, k6 = jax.random.split(key, 6)

    N = 16            # graph nodes (small synthetic graph)
    H = 128           # module default h_dim -> lane-dense
    E = 300           # edges
    n_rel = 86        # module constant -> rel_emb has 2*n_rel rows
    R = 2 * n_rel

    ent_emb = jax.random.normal(k1, (N, H), dtype=jnp.float32)
    rel_emb = jax.random.normal(k2, (R, H), dtype=jnp.float32)
    src = jax.random.randint(k3, (E,), 0, N, dtype=jnp.int32)
    dst = jax.random.randint(k4, (E,), 0, N, dtype=jnp.int32)
    rel_id = jax.random.randint(k5, (E,), 0, R, dtype=jnp.int32)

    # xavier_normal_ init of neigh_w [H,H]: std = sqrt(2 / (fan_in + fan_out))
    xavier_std = (2.0 / (H + H)) ** 0.5
    neigh_w = xavier_std * jax.random.normal(k6, (H, H), dtype=jnp.float32)

    ref = comp_layer_reference(ent_emb, rel_emb, src, dst, rel_id, neigh_w)

    # Default: single 512-edge tile (whole demo graph in one grid step).
    out = comp_layer_forward(ent_emb, rel_emb, src, dst, rel_id, neigh_w)
    jax.block_until_ready(out)
    assert out.shape == (N, H)
    max_err = float(jnp.max(jnp.abs(out - ref)))
    assert max_err < 5e-2, f"mismatch vs reference (single tile): max abs err {max_err}"

    # Also exercise the multi-tile online-softmax path (3 tiles of 128 edges).
    out_mt = comp_layer_forward(ent_emb, rel_emb, src, dst, rel_id, neigh_w, tile_e=128)
    jax.block_until_ready(out_mt)
    max_err_mt = float(jnp.max(jnp.abs(out_mt - ref)))
    assert max_err_mt < 5e-2, f"mismatch vs reference (multi-tile): max abs err {max_err_mt}"

    print("KERNEL_OK")
</pallas_src>

<mosaic_0001>
module attributes {stable_mosaic.version = 11 : i64} {
  func.func @_comp_layer_kernel(%arg0: i32, %arg1: memref<1x512xi32, #tpu.memory_space<vmem>>, %arg2: memref<1x512xi32, #tpu.memory_space<vmem>>, %arg3: memref<1x512xi32, #tpu.memory_space<vmem>>, %arg4: memref<16x128xf32, #tpu.memory_space<vmem>>, %arg5: memref<128x16xf32, #tpu.memory_space<vmem>>, %arg6: memref<128x256xf32, #tpu.memory_space<vmem>>, %arg7: memref<128x128xf32, #tpu.memory_space<vmem>>, %arg8: memref<16x128xf32, #tpu.memory_space<vmem>>, %arg9: memref<16x1xf32, #tpu.memory_space<vmem>>, %arg10: memref<16x1xf32, #tpu.memory_space<vmem>>, %arg11: memref<16x128xf32, #tpu.memory_space<vmem>>) attributes {dimension_semantics = [#tpu.dimension_semantics<arbitrary>], iteration_bounds = array<i64: 1>, scalar_prefetch = 0 : i64, scratch_operands = 3 : i64, tpu.core_type = #tpu.core_type<tc>, window_params = [{transform_indices = @transform_0, window_bounds = array<i64: 1, 512>}, {transform_indices = @transform_1, window_bounds = array<i64: 1, 512>}, {transform_indices = @transform_2, window_bounds = array<i64: 1, 512>}, {pipeline_mode = #tpu.pipeline_mode<synchronous>, transform_indices = @transform_3, window_bounds = array<i64: 16, 128>}, {pipeline_mode = #tpu.pipeline_mode<synchronous>, transform_indices = @transform_4, window_bounds = array<i64: 128, 16>}, {pipeline_mode = #tpu.pipeline_mode<synchronous>, transform_indices = @transform_5, window_bounds = array<i64: 128, 256>}, {pipeline_mode = #tpu.pipeline_mode<synchronous>, transform_indices = @transform_6, window_bounds = array<i64: 128, 128>}, {pipeline_mode = #tpu.pipeline_mode<synchronous>, transform_indices = @transform_7, window_bounds = array<i64: 16, 128>}]} {
    %c0_i32 = arith.constant 0 : i32
    %0 = arith.cmpi eq, %arg0, %c0_i32 : i32
    %1 = arith.extui %0 : i1 to i32
    %c0_i32_0 = arith.constant 0 : i32
    %2 = arith.cmpi ne, %1, %c0_i32_0 : i32
    scf.if %2 {
      %cst_39 = arith.constant -1.000000e+30 : f32
      %59 = vector.broadcast %cst_39 : f32 to vector<16x1xf32>
      %c0_40 = arith.constant 0 : index
      %c0_41 = arith.constant 0 : index
      %60 = vector.load %arg9[%c0_40, %c0_41] : memref<16x1xf32, #tpu.memory_space<vmem>>, vector<16x1xf32>
      tpu.vector_store %arg9[%c0_40, %c0_41], %59 {strides = array<i32>} : memref<16x1xf32, #tpu.memory_space<vmem>>, vector<16x1xf32>,
      %cst_42 = arith.constant 0.000000e+00 : f32
      %61 = vector.broadcast %cst_42 : f32 to vector<16x1xf32>
      %c0_43 = arith.constant 0 : index
      %c0_44 = arith.constant 0 : index
      %62 = vector.load %arg10[%c0_43, %c0_44] : memref<16x1xf32, #tpu.memory_space<vmem>>, vector<16x1xf32>
      tpu.vector_store %arg10[%c0_43, %c0_44], %61 {strides = array<i32>} : memref<16x1xf32, #tpu.memory_space<vmem>>, vector<16x1xf32>,
      %cst_45 = arith.constant 0.000000e+00 : f32
      %63 = vector.broadcast %cst_45 : f32 to vector<16x128xf32>
      %c0_46 = arith.constant 0 : index
      %c0_47 = arith.constant 0 : index
      %64 = vector.load %arg11[%c0_46, %c0_47] : memref<16x128xf32, #tpu.memory_space<vmem>>, vector<16x128xf32>
      tpu.vector_store %arg11[%c0_46, %c0_47], %63 {strides = array<i32>} : memref<16x128xf32, #tpu.memory_space<vmem>>, vector<16x128xf32>,
    } else {
    }
    %c0 = arith.constant 0 : index
    %c0_1 = arith.constant 0 : index
    %3 = vector.load %arg4[%c0, %c0_1] : memref<16x128xf32, #tpu.memory_space<vmem>>, vector<16x128xf32>
    %c0_2 = arith.constant 0 : index
    %c0_3 = arith.constant 0 : index
    %4 = vector.load %arg5[%c0_2, %c0_3] : memref<128x16xf32, #tpu.memory_space<vmem>>, vector<128x16xf32>
    %c0_4 = arith.constant 0 : index
    %c0_5 = arith.constant 0 : index
    %5 = vector.load %arg6[%c0_4, %c0_5] : memref<128x256xf32, #tpu.memory_space<vmem>>, vector<128x256xf32>
    %c0_6 = arith.constant 0 : index
    %c0_7 = arith.constant 0 : index
    %6 = vector.load %arg1[%c0_6, %c0_7] : memref<1x512xi32, #tpu.memory_space<vmem>>, vector<1x512xi32>
    %c0_8 = arith.constant 0 : index
    %c0_9 = arith.constant 0 : index
    %7 = vector.load %arg2[%c0_8, %c0_9] : memref<1x512xi32, #tpu.memory_space<vmem>>, vector<1x512xi32>
    %c0_10 = arith.constant 0 : index
    %c0_11 = arith.constant 0 : index
    %8 = vector.load %arg3[%c0_10, %c0_11] : memref<1x512xi32, #tpu.memory_space<vmem>>, vector<1x512xi32>
    %9 = tpu.iota {dimensions = array<i32: 0>} : vector<16x512xi32>
    %10 = vector.broadcast %6 : vector<1x512xi32> to vector<16x512xi32>
    %11 = arith.cmpi eq, %9, %10 : vector<16x512xi32>
    %cst = arith.constant 1.000000e+00 : f32
    %cst_12 = arith.constant 0.000000e+00 : f32
    %12 = vector.broadcast %cst : f32 to vector<16x512xf32>
    %13 = vector.broadcast %cst_12 : f32 to vector<16x512xf32>
    %14 = arith.select %11, %12, %13 : vector<16x512xi1>, vector<16x512xf32>
    %15 = tpu.iota {dimensions = array<i32: 0>} : vector<256x512xi32>
    %16 = vector.broadcast %7 : vector<1x512xi32> to vector<256x512xi32>
    %17 = arith.cmpi eq, %15, %16 : vector<256x512xi32>
    %cst_13 = arith.constant 1.000000e+00 : f32
    %cst_14 = arith.constant 0.000000e+00 : f32
    %18 = vector.broadcast %cst_13 : f32 to vector<256x512xf32>
    %19 = vector.broadcast %cst_14 : f32 to vector<256x512xf32>
    %20 = arith.select %17, %18, %19 : vector<256x512xi1>, vector<256x512xf32>
    %cst_15 = arith.constant dense<0.000000e+00> : vector<128x512xf32>
    %21 = tpu.matmul %4, %14, %cst_15 {dimension_numbers = #tpu.dot_dimension_numbers<[1], [0], [0], [1], [0, 0, 1, 1], [], []>} : vector<128x16xf32>, vector<16x512xf32>, vector<128x512xf32> -> vector<128x512xf32>
    %cst_16 = arith.constant dense<0.000000e+00> : vector<128x512xf32>
    %22 = tpu.matmul %5, %20, %cst_16 {dimension_numbers = #tpu.dot_dimension_numbers<[1], [0], [0], [1], [0, 0, 1, 1], [], []>} : vector<128x256xf32>, vector<256x512xf32>, vector<128x512xf32> -> vector<128x512xf32>
    %23 = arith.mulf %21, %22 : vector<128x512xf32>
    %cst_17 = arith.constant dense<0.000000e+00> : vector<16x512xf32>
    %24 = tpu.matmul %3, %23, %cst_17 {dimension_numbers = #tpu.dot_dimension_numbers<[1], [0], [0], [1], [0, 0, 1, 1], [], []>} : vector<16x128xf32>, vector<128x512xf32>, vector<16x512xf32> -> vector<16x512xf32>
    %25 = tpu.iota {dimensions = array<i32: 0>} : vector<16x512xi32>
    %26 = vector.broadcast %8 : vector<1x512xi32> to vector<16x512xi32>
    %27 = arith.cmpi eq, %25, %26 : vector<16x512xi32>
    %cst_18 = arith.constant -1.000000e+30 : f32
    %28 = vector.broadcast %cst_18 : f32 to vector<16x512xf32>
    %29 = arith.select %27, %24, %28 : vector<16x512xi1>, vector<16x512xf32>
    %c0_19 = arith.constant 0 : index
    %c0_20 = arith.constant 0 : index
    %30 = vector.load %arg9[%c0_19, %c0_20] : memref<16x1xf32, #tpu.memory_space<vmem>>, vector<16x1xf32>
    %cst_21 = arith.constant dense<0xFF800000> : vector<16xf32>
    %31 = vector.multi_reduction <maximumf>, %29, %cst_21 [1] : vector<16x512xf32> to vector<16xf32>
    %32 = vector.shape_cast %31 : vector<16xf32> to vector<16x1xf32>
    %33 = arith.maximumf %30, %32 : vector<16x1xf32>
    %34 = arith.subf %30, %33 : vector<16x1xf32>
    %35 = math.exp %34 : vector<16x1xf32>
    %36 = vector.broadcast %33 : vector<16x1xf32> to vector<16x512xf32>
    %37 = arith.subf %29, %36 : vector<16x512xf32>
    %38 = math.exp %37 : vector<16x512xf32>
    %cst_22 = arith.constant 0.000000e+00 : f32
    %39 = vector.broadcast %cst_22 : f32 to vector<16x512xf32>
    %40 = arith.select %27, %38, %39 : vector<16x512xi1>, vector<16x512xf32>
    %c0_23 = arith.constant 0 : index
    %c0_24 = arith.constant 0 : index
    %41 = vector.load %arg10[%c0_23, %c0_24] : memref<16x1xf32, #tpu.memory_space<vmem>>, vector<16x1xf32>
    %42 = arith.mulf %35, %41 : vector<16x1xf32>
    %cst_25 = arith.constant dense<0.000000e+00> : vector<16xf32>
    %43 = vector.multi_reduction <add>, %40, %cst_25 [1] : vector<16x512xf32> to vector<16xf32>
    %44 = vector.shape_cast %43 : vector<16xf32> to vector<16x1xf32>
    %45 = arith.addf %42, %44 : vector<16x1xf32>
    %c0_26 = arith.constant 0 : index
    %c0_27 = arith.constant 0 : index
    %46 = vector.load %arg10[%c0_26, %c0_27] : memref<16x1xf32, #tpu.memory_space<vmem>>, vector<16x1xf32>
    tpu.vector_store %arg10[%c0_26, %c0_27], %45 {strides = array<i32>} : memref<16x1xf32, #tpu.memory_space<vmem>>, vector<16x1xf32>,
    %c0_28 = arith.constant 0 : index
    %c0_29 = arith.constant 0 : index
    %47 = vector.load %arg11[%c0_28, %c0_29] : memref<16x128xf32, #tpu.memory_space<vmem>>, vector<16x128xf32>
    %48 = vector.broadcast %35 : vector<16x1xf32> to vector<16x128xf32>
    %49 = arith.mulf %48, %47 : vector<16x128xf32>
    %50 = arith.truncf %40 : vector<16x512xf32> to vector<16x512xbf16>
    %51 = arith.truncf %23 : vector<128x512xf32> to vector<128x512xbf16>
    %cst_30 = arith.constant dense<0.000000e+00> : vector<16x128xf32>
    %52 = tpu.matmul %50, %51, %cst_30 {dimension_numbers = #tpu.dot_dimension_numbers<[1], [1], [0], [0], [0, 0, 1, 0], [], []>} : vector<16x512xbf16>, vector<128x512xbf16>, vector<16x128xf32> -> vector<16x128xf32>
    %53 = arith.addf %49, %52 : vector<16x128xf32>
    %c0_31 = arith.constant 0 : index
    %c0_32 = arith.constant 0 : index
    %54 = vector.load %arg11[%c0_31, %c0_32] : memref<16x128xf32, #tpu.memory_space<vmem>>, vector<16x128xf32>
    tpu.vector_store %arg11[%c0_31, %c0_32], %53 {strides = array<i32>} : memref<16x128xf32, #tpu.memory_space<vmem>>, vector<16x128xf32>,
    %c0_33 = arith.constant 0 : index
    %c0_34 = arith.constant 0 : index
    %55 = vector.load %arg9[%c0_33, %c0_34] : memref<16x1xf32, #tpu.memory_space<vmem>>, vector<16x1xf32>
    tpu.vector_store %arg9[%c0_33, %c0_34], %33 {strides = array<i32>} : memref<16x1xf32, #tpu.memory_space<vmem>>, vector<16x1xf32>,
    %c0_i32_35 = arith.constant 0 : i32
    %56 = arith.cmpi eq, %arg0, %c0_i32_35 : i32
    %57 = arith.extui %56 : i1 to i32
    %cst_36 = arith.constant 0.000000e+00 : f32
    %cst_37 = arith.constant 1.000000e+00 : f32
    %c0_i32_38 = arith.constant 0 : i32
    %58 = arith.cmpi ne, %57, %c0_i32_38 : i32
    scf.if %58 {
      %c0_39 = arith.constant 0 : index
      %c0_40 = arith.constant 0 : index
      %59 = vector.load %arg10[%c0_39, %c0_40] : memref<16x1xf32, #tpu.memory_space<vmem>>, vector<16x1xf32>
      %60 = vector.broadcast %cst_36 : f32 to vector<16x1xf32>
      %61 = arith.cmpf ogt, %59, %60 : vector<16x1xf32>
      %62 = vector.broadcast %cst_37 : f32 to vector<16x1xf32>
      %63 = arith.select %61, %59, %62 : vector<16x1xi1>, vector<16x1xf32>
      %c0_41 = arith.constant 0 : index
      %c0_42 = arith.constant 0 : index
      %64 = vector.load %arg11[%c0_41, %c0_42] : memref<16x128xf32, #tpu.memory_space<vmem>>, vector<16x128xf32>
      %65 = vector.broadcast %63 : vector<16x1xf32> to vector<16x128xf32>
      %66 = arith.divf %64, %65 : vector<16x128xf32>
      %c0_43 = arith.constant 0 : index
      %c0_44 = arith.constant 0 : index
      %67 = vector.load %arg7[%c0_43, %c0_44] : memref<128x128xf32, #tpu.memory_space<vmem>>, vector<128x128xf32>
      %cst_45 = arith.constant dense<0.000000e+00> : vector<16x128xf32>
      %68 = tpu.matmul %66, %67, %cst_45 {dimension_numbers = #tpu.dot_dimension_numbers<[1], [0], [0], [1], [0, 0, 1, 1], [], []>} : vector<16x128xf32>, vector<128x128xf32>, vector<16x128xf32> -> vector<16x128xf32>
      %cst_46 = arith.constant dense<0.000000e+00> : vector<128xf32>
      %69 = vector.multi_reduction <add>, %68, %cst_46 [0] : vector<16x128xf32> to vector<128xf32>
      %70 = vector.shape_cast %69 : vector<128xf32> to vector<1x128xf32>
      %cst_47 = arith.constant 1.600000e+01 : f32
      %71 = vector.broadcast %cst_47 : f32 to vector<1x128xf32>
      %72 = arith.divf %70, %71 : vector<1x128xf32>
      %73 = vector.broadcast %72 : vector<1x128xf32> to vector<16x128xf32>
      %74 = arith.subf %68, %73 : vector<16x128xf32>
      %75 = arith.mulf %74, %74 : vector<16x128xf32>
      %cst_48 = arith.constant dense<0.000000e+00> : vector<128xf32>
      %76 = vector.multi_reduction <add>, %75, %cst_48 [0] : vector<16x128xf32> to vector<128xf32>
      %77 = vector.shape_cast %76 : vector<128xf32> to vector<1x128xf32>
      %cst_49 = arith.constant 1.600000e+01 : f32
      %78 = vector.broadcast %cst_49 : f32 to vector<1x128xf32>
      %79 = arith.divf %77, %78 : vector<1x128xf32>
      %cst_50 = arith.constant 9.99999974E-6 : f32
      %80 = vector.broadcast %cst_50 : f32 to vector<1x128xf32>
      %81 = arith.addf %79, %80 : vector<1x128xf32>
      %82 = math.rsqrt %81 : vector<1x128xf32>
      %83 = vector.broadcast %82 : vector<1x128xf32> to vector<16x128xf32>
      %84 = arith.mulf %74, %83 : vector<16x128xf32>
      %85 = math.tanh %84 : vector<16x128xf32>
      %c0_51 = arith.constant 0 : index
      %c0_52 = arith.constant 0 : index
      %86 = vector.load %arg8[%c0_51, %c0_52] : memref<16x128xf32, #tpu.memory_space<vmem>>, vector<16x128xf32>
      tpu.vector_store %arg8[%c0_51, %c0_52], %85 {strides = array<i32>} : memref<16x128xf32, #tpu.memory_space<vmem>>, vector<16x128xf32>,
    } else {
    }
    return
  }
  func.func @transform_0(%arg0: i32) -> (i32, i32) {
    %c0_i32 = arith.constant 0 : i32
    %c0_i32_0 = arith.constant 0 : i32
    return %c0_i32, %arg0 : i32, i32
  }
  func.func @transform_1(%arg0: i32) -> (i32, i32) {
    %c0_i32 = arith.constant 0 : i32
    %c0_i32_0 = arith.constant 0 : i32
    return %c0_i32, %arg0 : i32, i32
  }
  func.func @transform_2(%arg0: i32) -> (i32, i32) {
    %c0_i32 = arith.constant 0 : i32
    %c0_i32_0 = arith.constant 0 : i32
    return %c0_i32, %arg0 : i32, i32
  }
  func.func @transform_3(%arg0: i32) -> (i32, i32) {
    %c0_i32 = arith.constant 0 : i32
    %c0_i32_0 = arith.constant 0 : i32
    %c0_i32_1 = arith.constant 0 : i32
    return %c0_i32, %c0_i32_0 : i32, i32
  }
  func.func @transform_4(%arg0: i32) -> (i32, i32) {
    %c0_i32 = arith.constant 0 : i32
    %c0_i32_0 = arith.constant 0 : i32
    %c0_i32_1 = arith.constant 0 : i32
    return %c0_i32, %c0_i32_0 : i32, i32
  }
  func.func @transform_5(%arg0: i32) -> (i32, i32) {
    %c0_i32 = arith.constant 0 : i32
    %c0_i32_0 = arith.constant 0 : i32
    %c0_i32_1 = arith.constant 0 : i32
    return %c0_i32, %c0_i32_0 : i32, i32
  }
  func.func @transform_6(%arg0: i32) -> (i32, i32) {
    %c0_i32 = arith.constant 0 : i32
    %c0_i32_0 = arith.constant 0 : i32
    %c0_i32_1 = arith.constant 0 : i32
    return %c0_i32, %c0_i32_0 : i32, i32
  }
  func.func @transform_7(%arg0: i32) -> (i32, i32) {
    %c0_i32 = arith.constant 0 : i32
    %c0_i32_0 = arith.constant 0 : i32
    %c0_i32_1 = arith.constant 0 : i32
    return %c0_i32, %c0_i32_0 : i32, i32
  }
}

</mosaic_0001>

<bundles_post_ra>
// kernel: tpu_custom_call.1
= control target key start
LH: loop header
LB: loop body
LE: loop exit
PB: predicated region body
PF: predicated region fallthrough
CT: control target
= control target key end

     0   :  { %12 = vsyncpa [#allocation6], 0  ;;  %s3484_s0 = inlined_call_operand.vmem [shape: s32[1,512], index: 0, kind: input, shape index: {}]   ;;  %s3485_s1 = inlined_call_operand.vmem [shape: s32[1,512], index: 1, kind: input, shape index: {}]   ;;  %s3486_s2 = inlined_call_operand.vmem [shape: s32[1,512], index: 2, kind: input, shape index: {}]   ;;  %s3487_s3 = inlined_call_operand.vmem [shape: f32[16,128], index: 3, kind: input, shape index: {}]   ;;  %s3488_s4 = inlined_call_operand.vmem [shape: f32[128,16], index: 4, kind: input, shape index: {}]   ;;  %s3489_s5 = inlined_call_operand.hbm [shape: f32[128,256], index: 5, kind: input, shape index: {}]   ;;  %s3490_s6 = inlined_call_operand.vmem [shape: f32[128,128], index: 6, kind: input, shape index: {}]   ;;  %s3491_s7 = inlined_call_operand.hbm [shape: f32[16,128], index: 7, kind: output, shape index: {}]  }
   0x1   :  { %13 = vsyncpa [#allocation7], 0  ;;  %s2322_s24 = smov [#allocation5]   ;;  %s2274_s28 = scalar_lea.hbm %s3489_s5, 4096 }
   0x2   :  { %s29_s25 = sshll.u32 %s2322_s24, 4  ;;  %p2275_p0 = scmp.ne.s32.totalorder %s3489_s5, %s2274_s28  ;;  %s30_s25 = int_to_ptr.vmem [resolvable:$true] %s29_s25 }
   0x3   :  { %p2278_p1 = scmp.lt.u32.totalorder %s2274_s28, %s3489_s5 }
   0x5   :  { %p2280_p2 = pnand %p2278_p1, %p2275_p0 }
   0x7   :  { %2283 = shalt.err (!%p2280_p2)
}
   0x8   :  { %s2284_s10 = scalar_lea.vmem %s30_s25, 4096  ;;  %p2289_p4 = scmp.lt.s32.totalorder %s30_s25, %s30_s25 }
   0x9   :  { %p2285_p3 = scmp.ne.s32.totalorder %s30_s25, %s2284_s10  ;;  %p2290_p5 = scmp.lt.s32.totalorder %s2284_s10, %s2284_s10 }
   0xb   :  { %p2291_p6 = por %p2290_p5, %p2289_p4 }
   0xd   :  { %p2292_p7 = pnand %p2291_p6, %p2285_p3 }
   0xf   :  { %2295 = shalt.err (!%p2292_p7)
}
  0x10   :  { %s2323_s11 = smov 256   ;;  %s2324_s12 = smov 16  }
  0x11   :  { %35 = dma.hbm_to_vmem [thread:$0]  %s3489_s5, 4096, %s30_s25, [#allocation6], %s2323_s11, %s2323_s11, %s2324_s12  }
  0x12   :  { %2318 = dma.done.wait [#allocation6], 4096  }
  0x13   :  { %2319 = vsyncadd [#allocation6], 4294963200  ;;  %v106_v0 = vlaneseq  ;;  %v3492_v1 = vmov 0.0   ;;  %v103_v8 = vld [vmem:[%s3484_s0] sm:$0xf]  ;;  %v56_v24 = vld [vmem:[%s3488_s4 + $0x8] sm:$0xff] }
  0x14   :  { %556 = vmatprep.mubr.f32.mxu0 %v3492_v1  ;;  %717 = vmatprep.mubr.f32.mxu1 %v3492_v1  ;;  %v104_v9 = vld [vmem:[%s3485_s1] sm:$0xf]  ;;  %v2326_v18 = vmov 1.0|1.0   ;;  %v57_v27 = vld [vmem:[%s3488_s4 + $0x10] sm:$0xff]  ;;  %v58_v30 = vld [vmem:[%s3488_s4 + $0x18] sm:$0xff] }
  0x15   :  { %v2386_v2 = vshrl.u32 %v106_v0, 7  ;;  %v55_v21 = vld [vmem:[%s3488_s4] sm:$0xff]  ;;  %v60_v36 = vld [vmem:[%s3488_s4 + $0x28] sm:$0xff]  ;;  %v61_v39 = vld [vmem:[%s3488_s4 + $0x30] sm:$0xff] }
  0x16   :  { %v59_v33 = vld [vmem:[%s3488_s4 + $0x20] sm:$0xff]  ;;  %v62_v42 = vld [vmem:[%s3488_s4 + $0x38] sm:$0xff]  ;;  %v64_v48 = vld [vmem:[%s3488_s4 + $0x48] sm:$0xff] }
  0x17   :  { %3502 = vst [vmem:[#allocation11_spill] sm:$0xff] %v2386_v2  ;;  %v2389_v3 = vsub.s32 1, %v2386_v2  ;;  %v2392_v4 = vsub.s32 3, %v2386_v2  ;;  %v2395_v5 = vsub.s32 0, %v2386_v2  ;;  %v2398_v6 = vsub.s32 2, %v2386_v2  ;;  %v63_v45 = vld [vmem:[%s3488_s4 + $0x40] sm:$0xff] }
  0x18   :  { %v2401_v7 = vadd.s32 8, %v2386_v2  ;;  %v141_v19 = vadd.s32 16, %v2386_v2  ;;  %v142_v20 = vadd.s32 24, %v2386_v2  ;;  %v143_v22 = vadd.s32 32, %v2386_v2  ;;  %v65_v51 = vld [vmem:[%s3488_s4 + $0x50] sm:$0xff]  ;;  %v66_v54 = vld [vmem:[%s3488_s4 + $0x58] sm:$0xff] }
  0x19   :  { %3503 = vst [vmem:[#allocation12_spill] sm:$0xff] %v2389_v3  ;;  %3504 = vst [vmem:[#allocation13_spill] sm:$0xff] %v2392_v4  ;;  %v116_v10 = vrot.slane %v103_v8, %v2389_v3  ;;  %v2411_v11 = vrot.slane %v104_v9, %v2389_v3  ;;  %v124_v12 = vrot.slane %v103_v8, %v2392_v4  ;;  %v144_v23 = vadd.s32 40, %v2386_v2  ;;  %v67_v57 = vld [vmem:[%s3488_s4 + $0x60] sm:$0xff]  ;;  %v68_v60 = vld [vmem:[%s3488_s4 + $0x68] sm:$0xff] }
  0x1a   :  { %3505 = vst [vmem:[#allocation14_spill] sm:$0xff] %v2395_v5  ;;  %3506 = vst [vmem:[#allocation15_spill] sm:$0xff] %v2398_v6  ;;  %v2415_v13 = vrot.slane %v104_v9, %v2392_v4  ;;  %v112_v14 = vrot.slane %v103_v8, %v2395_v5  ;;  %v2419_v15 = vrot.slane %v104_v9, %v2395_v5  ;;  %v145_v25 = vadd.s32 48, %v2386_v2  ;;  %v69_v63 = vld [vmem:[%s3488_s4 + $0x70] sm:$0xff]  ;;  %v70_v0 = vld [vmem:[%s3488_s4 + $0x78] sm:$0xff] }
  0x1b   :  { %3507 = vst [vmem:[#allocation16_spill] sm:$0xff] %v2401_v7  ;;  %v120_v16 = vrot.slane %v103_v8, %v2398_v6  ;;  %v2423_v17 = vrot.slane %v104_v9, %v2398_v6  ;;  %vm126_vm0 = vcmp.eq.s32.totalorder %v2386_v2, %v116_v10  ;;  %vm130_vm1 = vcmp.eq.s32.totalorder %v2401_v7, %v116_v10  ;;  %v72_v8 = vld [vmem:[#allocation5 + $0x8] sm:$0xff]  ;;  %v71_v9 = vld [vmem:[#allocation5] sm:$0xff]  ;;  %v74_v10 = vld [vmem:[#allocation5 + $0x18] sm:$0xff] }
  0x1c   :  { %vm128_vm2 = vcmp.eq.s32.totalorder %v2386_v2, %v124_v12  ;;  %vm132_vm3 = vcmp.eq.s32.totalorder %v2401_v7, %v124_v12  ;;  %vm2000_vm4 = vmpackc.low %vm130_vm1, %vm126_vm0  ;;  %vm125_vm5 = vcmp.eq.s32.totalorder %v2386_v2, %v112_v14  ;;  %vm129_vm6 = vcmp.eq.s32.totalorder %v2401_v7, %v112_v14  ;;  %v76_v12 = vld [vmem:[#allocation5 + $0x28] sm:$0xff]  ;;  %v78_v14 = vld [vmem:[#allocation5 + $0x38] sm:$0xff] }
  0x1d   :  { %vm127_vm7 = vcmp.eq.s32.totalorder %v2386_v2, %v120_v16  ;;  %vm131_vm8 = vcmp.eq.s32.totalorder %v2401_v7, %v120_v16  ;;  %2001 = vmatprep.subr.msk.bf16.mxu0 %vm2000_vm4, %v2326_v18  ;;  %vm2004_vm9 = vmpackc.low %vm132_vm3, %vm128_vm2  ;;  %vm188_vm10 = vcmp.eq.s32.totalorder %v2386_v2, %v2411_v11  ;;  %vm192_vm11 = vcmp.eq.s32.totalorder %v2401_v7, %v2411_v11  ;;  %v80_v16 = vld [vmem:[#allocation5 + $0x48] sm:$0xff] }
  0x1e   :  { %2005 = vmatprep.subr.msk.bf16.mxu1 %vm2004_vm9, %v2326_v18  ;;  %vm2002_vm12 = vmpackc.low %vm129_vm6, %vm125_vm5  ;;  %vm190_vm13 = vcmp.eq.s32.totalorder %v2386_v2, %v2415_v13  ;;  %vm194_vm14 = vcmp.eq.s32.totalorder %v2401_v7, %v2415_v13  ;;  %vm443_vm0 = vcmask 130048   ;;  %vm187_vm1 = vcmp.eq.s32.totalorder %v2386_v2, %v2419_v15 }
  0x1f   :  { %2003 = vmatpush1.bf16.msk.msra.mxu0 %vm2002_vm12, %v2326_v18  ;;  %vm2006_vm15 = vmpackc.low %vm131_vm8, %vm127_vm7  ;;  %vm191_vm2 = vcmp.eq.s32.totalorder %v2401_v7, %v2419_v15  ;;  %vm189_vm4 = vcmp.eq.s32.totalorder %v2386_v2, %v2423_v17  ;;  %vm193_vm5 = vcmp.eq.s32.totalorder %v2401_v7, %v2423_v17  ;;  %vm196_vm7 = vcmp.eq.s32.totalorder %v141_v19, %v2411_v11 }
  0x20   :  { %2007 = vmatpush1.bf16.msk.msra.mxu1 %vm2006_vm15, %v2326_v18  ;;  %vm2008_vm3 = vmpackc.low %vm192_vm11, %vm188_vm10  ;;  %vm200_vm8 = vcmp.eq.s32.totalorder %v142_v20, %v2411_v11  ;;  %vm198_vm10 = vcmp.eq.s32.totalorder %v141_v19, %v2415_v13  ;;  %vm202_vm11 = vcmp.eq.s32.totalorder %v142_v20, %v2415_v13  ;;  %v146_v26 = vadd.s32 56, %v2386_v2 }
  0x21   :  { %2009 = vmatprep.subr.msk.bf16.mxu0 %vm2008_vm3, %v2326_v18  ;;  %vm2072_vm6 = vmpackc.low %vm194_vm14, %vm190_vm13  ;;  %vm195_vm13 = vcmp.eq.s32.totalorder %v141_v19, %v2419_v15  ;;  %vm199_vm14 = vcmp.eq.s32.totalorder %v142_v20, %v2419_v15  ;;  %v147_v28 = vadd.s32 64, %v2386_v2  ;;  %v148_v29 = vadd.s32 72, %v2386_v2 }
  0x22   :  { %1771 = vmatmul.mubr.msk.f32.vlgmr.msra.gmra.mrb[0].mxu0 %vm443_vm0, %v55_v21  ;;  %2073 = vmatprep.subr.msk.bf16.mxu1 %vm2072_vm6, %v2326_v18  ;;  %vm2010_vm9 = vmpackc.low %vm191_vm2, %vm187_vm1  ;;  %vm197_vm1 = vcmp.eq.s32.totalorder %v141_v19, %v2423_v17  ;;  %vm201_vm2 = vcmp.eq.s32.totalorder %v142_v20, %v2423_v17  ;;  %v149_v31 = vadd.s32 80, %v2386_v2  ;;  %v150_v32 = vadd.s32 88, %v2386_v2  ;;  %v81_v19 = vld [vmem:[#allocation5 + $0x50] sm:$0xff]  ;;  %v84_v20 = vld [vmem:[#allocation5 + $0x68] sm:$0xff] }
  0x23   :  { %1791 = vmatmul.mubr.msk.f32.vlgmr.msra.gmra.mrb[0].mxu1 %vm443_vm0, %v55_v21  ;;  %2011 = vmatpush1.bf16.msk.msra.mxu0 %vm2010_vm9, %v2326_v18  ;;  %vm2074_vm12 = vmpackc.low %vm193_vm5, %vm189_vm4  ;;  %vm204_vm4 = vcmp.eq.s32.totalorder %v143_v22, %v2411_v11  ;;  %vm208_vm5 = vcmp.eq.s32.totalorder %v144_v23, %v2411_v11  ;;  %v151_v34 = vadd.s32 96, %v2386_v2  ;;  %v152_v35 = vadd.s32 104, %v2386_v2  ;;  %v83_v21 = vld [vmem:[#allocation5 + $0x60] sm:$0xff] }
  0x24   :  { %2075 = vmatpush1.bf16.msk.msra.mxu1 %vm2074_vm12, %v2326_v18  ;;  %562 = vmatprep.mubr.f32.mxu0 %v3492_v1  ;;  %vm2012_vm15 = vmpackc.low %vm200_vm8, %vm196_vm7  ;;  %vm206_vm7 = vcmp.eq.s32.totalorder %v143_v22, %v2415_v13  ;;  %vm210_vm8 = vcmp.eq.s32.totalorder %v144_v23, %v2415_v13  ;;  %v153_v37 = vadd.s32 112, %v2386_v2  ;;  %v154_v38 = vadd.s32 120, %v2386_v2 }
  0x25   :  { %723 = vmatprep.mubr.f32.mxu1 %v3492_v1  ;;  %2013 = vmatprep.subr.msk.bf16.mxu0 %vm2012_vm15, %v2326_v18  ;;  %vm2076_vm3 = vmpackc.low %vm202_vm11, %vm198_vm10  ;;  %vm203_vm10 = vcmp.eq.s32.totalorder %v143_v22, %v2419_v15  ;;  %vm207_vm11 = vcmp.eq.s32.totalorder %v144_v23, %v2419_v15  ;;  %v155_v40 = vadd.s32 128, %v2386_v2  ;;  %v156_v41 = vadd.s32 136, %v2386_v2 }
  0x26   :  { %1772 = vmatmul.mubr.msk.f32.gmra.mrb[2].mxu0 %vm443_vm0, %v56_v24  ;;  %2077 = vmatprep.subr.msk.bf16.mxu1 %vm2076_vm3, %v2326_v18  ;;  %vm2014_vm6 = vmpackc.low %vm199_vm14, %vm195_vm13  ;;  %vm205_vm13 = vcmp.eq.s32.totalorder %v143_v22, %v2423_v17  ;;  %vm209_vm14 = vcmp.eq.s32.totalorder %v144_v23, %v2423_v17  ;;  %v157_v43 = vadd.s32 144, %v2386_v2  ;;  %v158_v44 = vadd.s32 152, %v2386_v2  ;;  %v86_v22 = vld [vmem:[#allocation5 + $0x78] sm:$0xff]  ;;  %v85_v23 = vld [vmem:[#allocation5 + $0x70] sm:$0xff] }
  0x27   :  { %1792 = vmatmul.mubr.msk.f32.gmra.mrb[2].mxu1 %vm443_vm0, %v56_v24  ;;  %2015 = vmatpush1.bf16.msk.msra.mxu0 %vm2014_vm6, %v2326_v18  ;;  %vm2078_vm9 = vmpackc.low %vm201_vm2, %vm197_vm1  ;;  %vm212_vm1 = vcmp.eq.s32.totalorder %v145_v25, %v2411_v11  ;;  %vm216_vm2 = vcmp.eq.s32.totalorder %v146_v26, %v2411_v11  ;;  %v159_v46 = vadd.s32 160, %v2386_v2  ;;  %v160_v47 = vadd.s32 168, %v2386_v2  ;;  %v88_v24 = vld [vmem:[#allocation5 + $0x88] sm:$0xff] }
  0x28   :  { %2079 = vmatpush1.bf16.msk.msra.mxu1 %vm2078_vm9, %v2326_v18  ;;  %568 = vmatprep.mubr.f32.mxu0 %v3492_v1  ;;  %vm2016_vm12 = vmpackc.low %vm208_vm5, %vm204_vm4  ;;  %vm214_vm4 = vcmp.eq.s32.totalorder %v145_v25, %v2415_v13  ;;  %vm218_vm5 = vcmp.eq.s32.totalorder %v146_v26, %v2415_v13  ;;  %v161_v49 = vadd.s32 176, %v2386_v2  ;;  %v162_v50 = vadd.s32 184, %v2386_v2 }
  0x29   :  { %729 = vmatprep.mubr.f32.mxu1 %v3492_v1  ;;  %2017 = vmatprep.subr.msk.bf16.mxu0 %vm2016_vm12, %v2326_v18  ;;  %vm2080_vm15 = vmpackc.low %vm210_vm8, %vm206_vm7  ;;  %vm211_vm7 = vcmp.eq.s32.totalorder %v145_v25, %v2419_v15  ;;  %vm215_vm8 = vcmp.eq.s32.totalorder %v146_v26, %v2419_v15  ;;  %v163_v52 = vadd.s32 192, %v2386_v2  ;;  %v164_v53 = vadd.s32 200, %v2386_v2 }
  0x2a   :  { %1773 = vmatmul.mubr.msk.f32.gmra.mrb[4].mxu0 %vm443_vm0, %v57_v27  ;;  %2081 = vmatprep.subr.msk.bf16.mxu1 %vm2080_vm15, %v2326_v18  ;;  %vm2018_vm3 = vmpackc.low %vm207_vm11, %vm203_vm10  ;;  %vm213_vm10 = vcmp.eq.s32.totalorder %v145_v25, %v2423_v17  ;;  %vm217_vm11 = vcmp.eq.s32.totalorder %v146_v26, %v2423_v17  ;;  %v165_v55 = vadd.s32 208, %v2386_v2  ;;  %v166_v56 = vadd.s32 216, %v2386_v2  ;;  %v87_v25 = vld [vmem:[#allocation5 + $0x80] sm:$0xff]  ;;  %v90_v26 = vld [vmem:[#allocation5 + $0x98] sm:$0xff] }
  0x2b   :  { %1793 = vmatmul.mubr.msk.f32.gmra.mrb[4].mxu1 %vm443_vm0, %v57_v27  ;;  %2019 = vmatpush1.bf16.msk.msra.mxu0 %vm2018_vm3, %v2326_v18  ;;  %vm2082_vm6 = vmpackc.low %vm209_vm14, %vm205_vm13  ;;  %vm220_vm13 = vcmp.eq.s32.totalorder %v147_v28, %v2411_v11  ;;  %vm224_vm14 = vcmp.eq.s32.totalorder %v148_v29, %v2411_v11  ;;  %v167_v58 = vadd.s32 224, %v2386_v2  ;;  %v168_v59 = vadd.s32 232, %v2386_v2  ;;  %v89_v27 = vld [vmem:[#allocation5 + $0x90] sm:$0xff] }
  0x2c   :  { %2083 = vmatpush1.bf16.msk.msra.mxu1 %vm2082_vm6, %v2326_v18  ;;  %574 = vmatprep.mubr.f32.mxu0 %v3492_v1  ;;  %vm2020_vm9 = vmpackc.low %vm216_vm2, %vm212_vm1  ;;  %vm222_vm1 = vcmp.eq.s32.totalorder %v147_v28, %v2415_v13  ;;  %vm226_vm2 = vcmp.eq.s32.totalorder %v148_v29, %v2415_v13  ;;  %v169_v61 = vadd.s32 240, %v2386_v2  ;;  %v170_v62 = vadd.s32 248, %v2386_v2 }
  0x2d   :  { %735 = vmatprep.mubr.f32.mxu1 %v3492_v1  ;;  %2021 = vmatprep.subr.msk.bf16.mxu0 %vm2020_vm9, %v2326_v18  ;;  %vm2084_vm12 = vmpackc.low %vm218_vm5, %vm214_vm4  ;;  %vm219_vm4 = vcmp.eq.s32.totalorder %v147_v28, %v2419_v15  ;;  %vm223_vm5 = vcmp.eq.s32.totalorder %v148_v29, %v2419_v15 }
  0x2e   :  { %1774 = vmatmul.mubr.msk.f32.gmra.mrb[6].mxu0 %vm443_vm0, %v58_v30  ;;  %2085 = vmatprep.subr.msk.bf16.mxu1 %vm2084_vm12, %v2326_v18  ;;  %vm2022_vm15 = vmpackc.low %vm215_vm8, %vm211_vm7  ;;  %vm221_vm7 = vcmp.eq.s32.totalorder %v147_v28, %v2423_v17  ;;  %vm225_vm8 = vcmp.eq.s32.totalorder %v148_v29, %v2423_v17  ;;  %v92_v28 = vld [vmem:[#allocation5 + $0xa8] sm:$0xff]  ;;  %v91_v29 = vld [vmem:[#allocation5 + $0xa0] sm:$0xff] }
  0x2f   :  { %1794 = vmatmul.mubr.msk.f32.gmra.mrb[6].mxu1 %vm443_vm0, %v58_v30  ;;  %2023 = vmatpush1.bf16.msk.msra.mxu0 %vm2022_vm15, %v2326_v18  ;;  %vm2086_vm3 = vmpackc.low %vm217_vm11, %vm213_vm10  ;;  %vm228_vm10 = vcmp.eq.s32.totalorder %v149_v31, %v2411_v11  ;;  %vm232_vm11 = vcmp.eq.s32.totalorder %v150_v32, %v2411_v11  ;;  %v94_v30 = vld [vmem:[#allocation5 + $0xb8] sm:$0xff] }
  0x30   :  { %2087 = vmatpush1.bf16.msk.msra.mxu1 %vm2086_vm3, %v2326_v18  ;;  %580 = vmatprep.mubr.f32.mxu0 %v3492_v1  ;;  %vm2024_vm6 = vmpackc.low %vm224_vm14, %vm220_vm13  ;;  %vm230_vm13 = vcmp.eq.s32.totalorder %v149_v31, %v2415_v13  ;;  %vm234_vm14 = vcmp.eq.s32.totalorder %v150_v32, %v2415_v13 }
  0x31   :  { %741 = vmatprep.mubr.f32.mxu1 %v3492_v1  ;;  %2025 = vmatprep.subr.msk.bf16.mxu0 %vm2024_vm6, %v2326_v18  ;;  %vm2088_vm9 = vmpackc.low %vm226_vm2, %vm222_vm1  ;;  %vm227_vm1 = vcmp.eq.s32.totalorder %v149_v31, %v2419_v15  ;;  %vm231_vm2 = vcmp.eq.s32.totalorder %v150_v32, %v2419_v15 }
  0x32   :  { %1775 = vmatmul.mubr.msk.f32.gmra.mrb[8].mxu0 %vm443_vm0, %v59_v33  ;;  %2089 = vmatprep.subr.msk.bf16.mxu1 %vm2088_vm9, %v2326_v18  ;;  %vm2026_vm12 = vmpackc.low %vm223_vm5, %vm219_vm4  ;;  %vm229_vm4 = vcmp.eq.s32.totalorder %v149_v31, %v2423_v17  ;;  %vm233_vm5 = vcmp.eq.s32.totalorder %v150_v32, %v2423_v17  ;;  %v93_v31 = vld [vmem:[#allocation5 + $0xb0] sm:$0xff]  ;;  %v96_v32 = vld [vmem:[#allocation5 + $0xc8] sm:$0xff] }
  0x33   :  { %1795 = vmatmul.mubr.msk.f32.gmra.mrb[8].mxu1 %vm443_vm0, %v59_v33  ;;  %2027 = vmatpush1.bf16.msk.msra.mxu0 %vm2026_vm12, %v2326_v18  ;;  %vm2090_vm15 = vmpackc.low %vm225_vm8, %vm221_vm7  ;;  %vm236_vm7 = vcmp.eq.s32.totalorder %v151_v34, %v2411_v11  ;;  %vm240_vm8 = vcmp.eq.s32.totalorder %v152_v35, %v2411_v11  ;;  %v95_v33 = vld [vmem:[#allocation5 + $0xc0] sm:$0xff] }
  0x34   :  { %2091 = vmatpush1.bf16.msk.msra.mxu1 %vm2090_vm15, %v2326_v18  ;;  %586 = vmatprep.mubr.f32.mxu0 %v3492_v1  ;;  %vm2028_vm3 = vmpackc.low %vm232_vm11, %vm228_vm10  ;;  %vm238_vm10 = vcmp.eq.s32.totalorder %v151_v34, %v2415_v13  ;;  %vm242_vm11 = vcmp.eq.s32.totalorder %v152_v35, %v2415_v13 }
  0x35   :  { %747 = vmatprep.mubr.f32.mxu1 %v3492_v1  ;;  %2029 = vmatprep.subr.msk.bf16.mxu0 %vm2028_vm3, %v2326_v18  ;;  %vm2092_vm6 = vmpackc.low %vm234_vm14, %vm230_vm13  ;;  %vm235_vm13 = vcmp.eq.s32.totalorder %v151_v34, %v2419_v15  ;;  %vm239_vm14 = vcmp.eq.s32.totalorder %v152_v35, %v2419_v15 }
  0x36   :  { %1776 = vmatmul.mubr.msk.f32.gmra.mrb[10].mxu0 %vm443_vm0, %v60_v36  ;;  %2093 = vmatprep.subr.msk.bf16.mxu1 %vm2092_vm6, %v2326_v18  ;;  %vm2030_vm9 = vmpackc.low %vm231_vm2, %vm227_vm1  ;;  %vm237_vm1 = vcmp.eq.s32.totalorder %v151_v34, %v2423_v17  ;;  %vm241_vm2 = vcmp.eq.s32.totalorder %v152_v35, %v2423_v17  ;;  %v98_v34 = vld [vmem:[#allocation5 + $0xd8] sm:$0xff]  ;;  %v97_v35 = vld [vmem:[#allocation5 + $0xd0] sm:$0xff] }
  0x37   :  { %1796 = vmatmul.mubr.msk.f32.gmra.mrb[10].mxu1 %vm443_vm0, %v60_v36  ;;  %2031 = vmatpush1.bf16.msk.msra.mxu0 %vm2030_vm9, %v2326_v18  ;;  %vm2094_vm12 = vmpackc.low %vm233_vm5, %vm229_vm4  ;;  %vm244_vm4 = vcmp.eq.s32.totalorder %v153_v37, %v2411_v11  ;;  %vm248_vm5 = vcmp.eq.s32.totalorder %v154_v38, %v2411_v11  ;;  %v100_v36 = vld [vmem:[#allocation5 + $0xe8] sm:$0xff] }
  0x38   :  { %2095 = vmatpush1.bf16.msk.msra.mxu1 %vm2094_vm12, %v2326_v18  ;;  %592 = vmatprep.mubr.f32.mxu0 %v3492_v1  ;;  %vm2032_vm15 = vmpackc.low %vm240_vm8, %vm236_vm7  ;;  %vm246_vm7 = vcmp.eq.s32.totalorder %v153_v37, %v2415_v13  ;;  %vm250_vm8 = vcmp.eq.s32.totalorder %v154_v38, %v2415_v13 }
  0x39   :  { %753 = vmatprep.mubr.f32.mxu1 %v3492_v1  ;;  %2033 = vmatprep.subr.msk.bf16.mxu0 %vm2032_vm15, %v2326_v18  ;;  %vm2096_vm3 = vmpackc.low %vm242_vm11, %vm238_vm10  ;;  %vm243_vm10 = vcmp.eq.s32.totalorder %v153_v37, %v2419_v15  ;;  %vm247_vm11 = vcmp.eq.s32.totalorder %v154_v38, %v2419_v15 }
  0x3a   :  { %1777 = vmatmul.mubr.msk.f32.gmra.mrb[12].mxu0 %vm443_vm0, %v61_v39  ;;  %2097 = vmatprep.subr.msk.bf16.mxu1 %vm2096_vm3, %v2326_v18  ;;  %vm2034_vm6 = vmpackc.low %vm239_vm14, %vm235_vm13  ;;  %vm245_vm13 = vcmp.eq.s32.totalorder %v153_v37, %v2423_v17  ;;  %vm249_vm14 = vcmp.eq.s32.totalorder %v154_v38, %v2423_v17  ;;  %v99_v37 = vld [vmem:[#allocation5 + $0xe0] sm:$0xff]  ;;  %v102_v38 = vld [vmem:[#allocation5 + $0xf8] sm:$0xff] }
  0x3b   :  { %1797 = vmatmul.mubr.msk.f32.gmra.mrb[12].mxu1 %vm443_vm0, %v61_v39  ;;  %2035 = vmatpush1.bf16.msk.msra.mxu0 %vm2034_vm6, %v2326_v18  ;;  %vm2098_vm9 = vmpackc.low %vm241_vm2, %vm237_vm1  ;;  %vm252_vm1 = vcmp.eq.s32.totalorder %v155_v40, %v2411_v11  ;;  %vm256_vm2 = vcmp.eq.s32.totalorder %v156_v41, %v2411_v11  ;;  %v101_v39 = vld [vmem:[#allocation5 + $0xf0] sm:$0xff] }
  0x3c   :  { %2099 = vmatpush1.bf16.msk.msra.mxu1 %vm2098_vm9, %v2326_v18  ;;  %598 = vmatprep.mubr.f32.mxu0 %v3492_v1  ;;  %vm2036_vm12 = vmpackc.low %vm248_vm5, %vm244_vm4  ;;  %vm254_vm4 = vcmp.eq.s32.totalorder %v155_v40, %v2415_v13  ;;  %vm258_vm5 = vcmp.eq.s32.totalorder %v156_v41, %v2415_v13 }
  0x3d   :  { %759 = vmatprep.mubr.f32.mxu1 %v3492_v1  ;;  %2037 = vmatprep.subr.msk.bf16.mxu0 %vm2036_vm12, %v2326_v18  ;;  %vm2100_vm15 = vmpackc.low %vm250_vm8, %vm246_vm7  ;;  %vm251_vm7 = vcmp.eq.s32.totalorder %v155_v40, %v2419_v15  ;;  %vm255_vm8 = vcmp.eq.s32.totalorder %v156_v41, %v2419_v15 }
  0x3e   :  { %1778 = vmatmul.mubr.msk.f32.gmra.mrb[14].mxu0 %vm443_vm0, %v62_v42  ;;  %2101 = vmatprep.subr.msk.bf16.mxu1 %vm2100_vm15, %v2326_v18  ;;  %vm2038_vm3 = vmpackc.low %vm247_vm11, %vm243_vm10  ;;  %vm253_vm10 = vcmp.eq.s32.totalorder %v155_v40, %v2423_v17  ;;  %vm257_vm11 = vcmp.eq.s32.totalorder %v156_v41, %v2423_v17 }
  0x3f   :  { %1798 = vmatmul.mubr.msk.f32.gmra.mrb[14].mxu1 %vm443_vm0, %v62_v42  ;;  %2039 = vmatpush1.bf16.msk.msra.mxu0 %vm2038_vm3, %v2326_v18  ;;  %vm2102_vm6 = vmpackc.low %vm249_vm14, %vm245_vm13  ;;  %vm260_vm13 = vcmp.eq.s32.totalorder %v157_v43, %v2411_v11  ;;  %vm264_vm14 = vcmp.eq.s32.totalorder %v158_v44, %v2411_v11 }
  0x40   :  { %2103 = vmatpush1.bf16.msk.msra.mxu1 %vm2102_vm6, %v2326_v18  ;;  %604 = vmatprep.mubr.f32.mxu0 %v3492_v1  ;;  %vm2040_vm9 = vmpackc.low %vm256_vm2, %vm252_vm1  ;;  %vm262_vm1 = vcmp.eq.s32.totalorder %v157_v43, %v2415_v13  ;;  %vm266_vm2 = vcmp.eq.s32.totalorder %v158_v44, %v2415_v13 }
  0x41   :  { %765 = vmatprep.mubr.f32.mxu1 %v3492_v1  ;;  %2041 = vmatprep.subr.msk.bf16.mxu0 %vm2040_vm9, %v2326_v18  ;;  %vm2104_vm12 = vmpackc.low %vm258_vm5, %vm254_vm4  ;;  %vm259_vm4 = vcmp.eq.s32.totalorder %v157_v43, %v2419_v15  ;;  %vm263_vm5 = vcmp.eq.s32.totalorder %v158_v44, %v2419_v15 }
  0x42   :  { %1779 = vmatmul.mubr.msk.f32.gmra.mrb[16].mxu0 %vm443_vm0, %v63_v45  ;;  %2105 = vmatprep.subr.msk.bf16.mxu1 %vm2104_vm12, %v2326_v18  ;;  %vm2042_vm15 = vmpackc.low %vm255_vm8, %vm251_vm7  ;;  %vm261_vm7 = vcmp.eq.s32.totalorder %v157_v43, %v2423_v17  ;;  %vm265_vm8 = vcmp.eq.s32.totalorder %v158_v44, %v2423_v17 }
  0x43   :  { %1799 = vmatmul.mubr.msk.f32.gmra.mrb[16].mxu1 %vm443_vm0, %v63_v45  ;;  %2043 = vmatpush1.bf16.msk.msra.mxu0 %vm2042_vm15, %v2326_v18  ;;  %vm2106_vm3 = vmpackc.low %vm257_vm11, %vm253_vm10  ;;  %vm268_vm10 = vcmp.eq.s32.totalorder %v159_v46, %v2411_v11  ;;  %vm272_vm11 = vcmp.eq.s32.totalorder %v160_v47, %v2411_v11 }
  0x44   :  { %2107 = vmatpush1.bf16.msk.msra.mxu1 %vm2106_vm3, %v2326_v18  ;;  %610 = vmatprep.mubr.f32.mxu0 %v3492_v1  ;;  %vm2044_vm6 = vmpackc.low %vm264_vm14, %vm260_vm13  ;;  %vm270_vm13 = vcmp.eq.s32.totalorder %v159_v46, %v2415_v13  ;;  %vm274_vm14 = vcmp.eq.s32.totalorder %v160_v47, %v2415_v13 }
  0x45   :  { %771 = vmatprep.mubr.f32.mxu1 %v3492_v1  ;;  %2045 = vmatprep.subr.msk.bf16.mxu0 %vm2044_vm6, %v2326_v18  ;;  %vm2108_vm9 = vmpackc.low %vm266_vm2, %vm262_vm1  ;;  %vm267_vm1 = vcmp.eq.s32.totalorder %v159_v46, %v2419_v15  ;;  %vm271_vm2 = vcmp.eq.s32.totalorder %v160_v47, %v2419_v15 }
  0x46   :  { %1780 = vmatmul.mubr.msk.f32.gmra.mrb[18].mxu0 %vm443_vm0, %v64_v48  ;;  %2109 = vmatprep.subr.msk.bf16.mxu1 %vm2108_vm9, %v2326_v18  ;;  %vm2046_vm12 = vmpackc.low %vm263_vm5, %vm259_vm4  ;;  %vm269_vm4 = vcmp.eq.s32.totalorder %v159_v46, %v2423_v17  ;;  %vm273_vm5 = vcmp.eq.s32.totalorder %v160_v47, %v2423_v17 }
  0x47   :  { %1800 = vmatmul.mubr.msk.f32.gmra.mrb[18].mxu1 %vm443_vm0, %v64_v48  ;;  %2047 = vmatpush1.bf16.msk.msra.mxu0 %vm2046_vm12, %v2326_v18  ;;  %vm2110_vm15 = vmpackc.low %vm265_vm8, %vm261_vm7  ;;  %vm276_vm7 = vcmp.eq.s32.totalorder %v161_v49, %v2411_v11  ;;  %vm280_vm8 = vcmp.eq.s32.totalorder %v162_v50, %v2411_v11 }
  0x48   :  { %2111 = vmatpush1.bf16.msk.msra.mxu1 %vm2110_vm15, %v2326_v18  ;;  %616 = vmatprep.mubr.f32.mxu0 %v3492_v1  ;;  %vm2048_vm3 = vmpackc.low %vm272_vm11, %vm268_vm10  ;;  %vm278_vm10 = vcmp.eq.s32.totalorder %v161_v49, %v2415_v13  ;;  %vm282_vm11 = vcmp.eq.s32.totalorder %v162_v50, %v2415_v13 }
  0x49   :  { %777 = vmatprep.mubr.f32.mxu1 %v3492_v1  ;;  %2049 = vmatprep.subr.msk.bf16.mxu0 %vm2048_vm3, %v2326_v18  ;;  %vm2112_vm6 = vmpackc.low %vm274_vm14, %vm270_vm13  ;;  %vm275_vm13 = vcmp.eq.s32.totalorder %v161_v49, %v2419_v15  ;;  %vm279_vm14 = vcmp.eq.s32.totalorder %v162_v50, %v2419_v15 }
  0x4a   :  { %1781 = vmatmul.mubr.msk.f32.gmra.mrb[20].mxu0 %vm443_vm0, %v65_v51  ;;  %2113 = vmatprep.subr.msk.bf16.mxu1 %vm2112_vm6, %v2326_v18  ;;  %vm2050_vm9 = vmpackc.low %vm271_vm2, %vm267_vm1  ;;  %vm277_vm1 = vcmp.eq.s32.totalorder %v161_v49, %v2423_v17  ;;  %vm281_vm2 = vcmp.eq.s32.totalorder %v162_v50, %v2423_v17 }
  0x4b   :  { %1801 = vmatmul.mubr.msk.f32.gmra.mrb[20].mxu1 %vm443_vm0, %v65_v51  ;;  %2051 = vmatpush1.bf16.msk.msra.mxu0 %vm2050_vm9, %v2326_v18  ;;  %vm2114_vm12 = vmpackc.low %vm273_vm5, %vm269_vm4  ;;  %vm284_vm4 = vcmp.eq.s32.totalorder %v163_v52, %v2411_v11  ;;  %vm288_vm5 = vcmp.eq.s32.totalorder %v164_v53, %v2411_v11 }
  0x4c   :  { %2115 = vmatpush1.bf16.msk.msra.mxu1 %vm2114_vm12, %v2326_v18  ;;  %622 = vmatprep.mubr.f32.mxu0 %v3492_v1  ;;  %vm2052_vm15 = vmpackc.low %vm280_vm8, %vm276_vm7  ;;  %vm286_vm7 = vcmp.eq.s32.totalorder %v163_v52, %v2415_v13  ;;  %vm290_vm8 = vcmp.eq.s32.totalorder %v164_v53, %v2415_v13 }
  0x4d   :  { %783 = vmatprep.mubr.f32.mxu1 %v3492_v1  ;;  %2053 = vmatprep.subr.msk.bf16.mxu0 %vm2052_vm15, %v2326_v18  ;;  %vm2116_vm3 = vmpackc.low %vm282_vm11, %vm278_vm10  ;;  %vm283_vm10 = vcmp.eq.s32.totalorder %v163_v52, %v2419_v15  ;;  %vm287_vm11 = vcmp.eq.s32.totalorder %v164_v53, %v2419_v15 }
  0x4e   :  { %1782 = vmatmul.mubr.msk.f32.gmra.mrb[22].mxu0 %vm443_vm0, %v66_v54  ;;  %2117 = vmatprep.subr.msk.bf16.mxu1 %vm2116_vm3, %v2326_v18  ;;  %vm2054_vm6 = vmpackc.low %vm279_vm14, %vm275_vm13  ;;  %vm285_vm13 = vcmp.eq.s32.totalorder %v163_v52, %v2423_v17  ;;  %vm289_vm14 = vcmp.eq.s32.totalorder %v164_v53, %v2423_v17 }
  0x4f   :  { %1802 = vmatmul.mubr.msk.f32.gmra.mrb[22].mxu1 %vm443_vm0, %v66_v54  ;;  %2055 = vmatpush1.bf16.msk.msra.mxu0 %vm2054_vm6, %v2326_v18  ;;  %vm2118_vm9 = vmpackc.low %vm281_vm2, %vm277_vm1  ;;  %vm292_vm1 = vcmp.eq.s32.totalorder %v165_v55, %v2411_v11  ;;  %vm296_vm2 = vcmp.eq.s32.totalorder %v166_v56, %v2411_v11 }
  0x50   :  { %2119 = vmatpush1.bf16.msk.msra.mxu1 %vm2118_vm9, %v2326_v18  ;;  %628 = vmatprep.mubr.f32.mxu0 %v3492_v1  ;;  %vm2056_vm12 = vmpackc.low %vm288_vm5, %vm284_vm4  ;;  %vm294_vm4 = vcmp.eq.s32.totalorder %v165_v55, %v2415_v13  ;;  %vm298_vm5 = vcmp.eq.s32.totalorder %v166_v56, %v2415_v13 }
  0x51   :  { %789 = vmatprep.mubr.f32.mxu1 %v3492_v1  ;;  %2057 = vmatprep.subr.msk.bf16.mxu0 %vm2056_vm12, %v2326_v18  ;;  %vm2120_vm15 = vmpackc.low %vm290_vm8, %vm286_vm7  ;;  %vm291_vm7 = vcmp.eq.s32.totalorder %v165_v55, %v2419_v15  ;;  %vm295_vm8 = vcmp.eq.s32.totalorder %v166_v56, %v2419_v15 }
  0x52   :  { %1783 = vmatmul.mubr.msk.f32.gmra.mrb[24].mxu0 %vm443_vm0, %v67_v57  ;;  %2121 = vmatprep.subr.msk.bf16.mxu1 %vm2120_vm15, %v2326_v18  ;;  %vm2058_vm3 = vmpackc.low %vm287_vm11, %vm283_vm10  ;;  %vm293_vm10 = vcmp.eq.s32.totalorder %v165_v55, %v2423_v17  ;;  %vm297_vm11 = vcmp.eq.s32.totalorder %v166_v56, %v2423_v17 }
  0x53   :  { %1803 = vmatmul.mubr.msk.f32.gmra.mrb[24].mxu1 %vm443_vm0, %v67_v57  ;;  %2059 = vmatpush1.bf16.msk.msra.mxu0 %vm2058_vm3, %v2326_v18  ;;  %vm2122_vm6 = vmpackc.low %vm289_vm14, %vm285_vm13  ;;  %vm300_vm13 = vcmp.eq.s32.totalorder %v167_v58, %v2411_v11  ;;  %vm304_vm14 = vcmp.eq.s32.totalorder %v168_v59, %v2411_v11 }
  0x54   :  { %2123 = vmatpush1.bf16.msk.msra.mxu1 %vm2122_vm6, %v2326_v18  ;;  %634 = vmatprep.mubr.f32.mxu0 %v3492_v1  ;;  %vm2060_vm9 = vmpackc.low %vm296_vm2, %vm292_vm1  ;;  %vm302_vm1 = vcmp.eq.s32.totalorder %v167_v58, %v2415_v13  ;;  %vm306_vm2 = vcmp.eq.s32.totalorder %v168_v59, %v2415_v13 }
  0x55   :  { %795 = vmatprep.mubr.f32.mxu1 %v3492_v1  ;;  %2061 = vmatprep.subr.msk.bf16.mxu0 %vm2060_vm9, %v2326_v18  ;;  %vm2124_vm12 = vmpackc.low %vm298_vm5, %vm294_vm4  ;;  %vm299_vm4 = vcmp.eq.s32.totalorder %v167_v58, %v2419_v15  ;;  %vm303_vm5 = vcmp.eq.s32.totalorder %v168_v59, %v2419_v15 }
  0x56   :  { %1784 = vmatmul.mubr.msk.f32.gmra.mrb[26].mxu0 %vm443_vm0, %v68_v60  ;;  %2125 = vmatprep.subr.msk.bf16.mxu1 %vm2124_vm12, %v2326_v18  ;;  %vm2062_vm15 = vmpackc.low %vm295_vm8, %vm291_vm7  ;;  %vm301_vm7 = vcmp.eq.s32.totalorder %v167_v58, %v2423_v17  ;;  %vm305_vm8 = vcmp.eq.s32.totalorder %v168_v59, %v2423_v17 }
  0x57   :  { %1804 = vmatmul.mubr.msk.f32.gmra.mrb[26].mxu1 %vm443_vm0, %v68_v60  ;;  %2063 = vmatpush1.bf16.msk.msra.mxu0 %vm2062_vm15, %v2326_v18  ;;  %vm2126_vm3 = vmpackc.low %vm297_vm11, %vm293_vm10  ;;  %vm308_vm10 = vcmp.eq.s32.totalorder %v169_v61, %v2411_v11  ;;  %vm312_vm11 = vcmp.eq.s32.totalorder %v170_v62, %v2411_v11  ;;  %v73_v11 = vld [vmem:[#allocation5 + $0x10] sm:$0xff] }
  0x58   :  { %2127 = vmatpush1.bf16.msk.msra.mxu1 %vm2126_vm3, %v2326_v18  ;;  %640 = vmatprep.mubr.f32.mxu0 %v3492_v1  ;;  %vm2064_vm6 = vmpackc.low %vm304_vm14, %vm300_vm13  ;;  %vm310_vm13 = vcmp.eq.s32.totalorder %v169_v61, %v2415_v13  ;;  %vm314_vm14 = vcmp.eq.s32.totalorder %v170_v62, %v2415_v13  ;;  %v75_v13 = vld [vmem:[#allocation5 + $0x20] sm:$0xff] }
  0x59   :  { %801 = vmatprep.mubr.f32.mxu1 %v3492_v1  ;;  %2065 = vmatprep.subr.msk.bf16.mxu0 %vm2064_vm6, %v2326_v18  ;;  %vm2128_vm9 = vmpackc.low %vm306_vm2, %vm302_vm1  ;;  %vm307_vm1 = vcmp.eq.s32.totalorder %v169_v61, %v2419_v15  ;;  %vm311_vm2 = vcmp.eq.s32.totalorder %v170_v62, %v2419_v15  ;;  %v77_v15 = vld [vmem:[#allocation5 + $0x30] sm:$0xff] }
  0x5a   :  { %1785 = vmatmul.mubr.msk.f32.gmra.mrb[28].mxu0 %vm443_vm0, %v69_v63  ;;  %2129 = vmatprep.subr.msk.bf16.mxu1 %vm2128_vm9, %v2326_v18  ;;  %vm2066_vm12 = vmpackc.low %vm303_vm5, %vm299_vm4  ;;  %vm309_vm4 = vcmp.eq.s32.totalorder %v169_v61, %v2423_v17  ;;  %vm313_vm5 = vcmp.eq.s32.totalorder %v170_v62, %v2423_v17  ;;  %v79_v17 = vld [vmem:[#allocation5 + $0x40] sm:$0xff] }
  0x5b   :  { %1805 = vmatmul.mubr.msk.f32.gmra.mrb[28].mxu1 %vm443_vm0, %v69_v63  ;;  %2067 = vmatpush1.bf16.msk.msra.mxu0 %vm2066_vm12, %v2326_v18  ;;  %vm2130_vm15 = vmpackc.low %vm305_vm8, %vm301_vm7 }
  0x5c   :  { %2131 = vmatpush1.bf16.msk.msra.mxu1 %vm2130_vm15, %v2326_v18  ;;  %646 = vmatprep.mubr.f32.mxu0 %v3492_v1  ;;  %vm2068_vm3 = vmpackc.low %vm312_vm11, %vm308_vm10 }
  0x5d   :  { %807 = vmatprep.mubr.f32.mxu1 %v3492_v1  ;;  %2069 = vmatprep.subr.msk.bf16.mxu0 %vm2068_vm3, %v2326_v18  ;;  %vm2132_vm6 = vmpackc.low %vm314_vm14, %vm310_vm13 }
  0x5e   :  { %1786 = vmatmul.mubr.msk.f32.gmra.mrb[30].mxu0 %vm443_vm0, %v70_v0  ;;  %2133 = vmatprep.subr.msk.bf16.mxu1 %vm2132_vm6, %v2326_v18  ;;  %vm2070_vm7 = vmpackc.low %vm311_vm2, %vm307_vm1 }
  0x5f   :  { %1806 = vmatmul.mubr.msk.f32.gmra.mrb[30].mxu1 %vm443_vm0, %v70_v0  ;;  %2071 = vmatpush1.bf16.msk.msra.mxu0 %vm2070_vm7, %v2326_v18  ;;  %vm2134_vm8 = vmpackc.low %vm313_vm5, %vm309_vm4  ;;  %vm46_vm0 = vcmask 7168  }
  0x60   :  { %2135 = vmatpush1.bf16.msk.msra.mxu1 %vm2134_vm8, %v2326_v18  ;;  %878 = vmatprep.mubr.f32.mxu0 %v72_v8  ;;  %v82_v18 = vld [vmem:[#allocation5 + $0x58] sm:$0xff] }
  0x61   :  { %1039 = vmatprep.mubr.f32.mxu1 %v72_v8 }
  0x62   :  { %879 = vmatmul.mubr.f32.vlgmr.msra.gmra.mrb[32].mxu0 %v71_v9 }
  0x63   :  { %1040 = vmatmul.mubr.f32.vlgmr.msra.gmra.mrb[32].mxu1 %v71_v9  ;;  %884 = vmatprep.mubr.f32.mxu0 %v74_v10 }
  0x64   :  { %1045 = vmatprep.mubr.f32.mxu1 %v74_v10 }
  0x66   :  { %885 = vmatmul.mubr.f32.gmra.mrb[34].mxu0 %v73_v11 }
  0x67   :  { %1046 = vmatmul.mubr.f32.gmra.mrb[34].mxu1 %v73_v11  ;;  %890 = vmatprep.mubr.f32.mxu0 %v76_v12 }
  0x68   :  { %1051 = vmatprep.mubr.f32.mxu1 %v76_v12 }
  0x6a   :  { %891 = vmatmul.mubr.f32.gmra.mrb[36].mxu0 %v75_v13 }
  0x6b   :  { %1052 = vmatmul.mubr.f32.gmra.mrb[36].mxu1 %v75_v13  ;;  %896 = vmatprep.mubr.f32.mxu0 %v78_v14 }
  0x6c   :  { %1057 = vmatprep.mubr.f32.mxu1 %v78_v14 }
  0x6e   :  { %897 = vmatmul.mubr.f32.gmra.mrb[38].mxu0 %v77_v15 }
  0x6f   :  { %1058 = vmatmul.mubr.f32.gmra.mrb[38].mxu1 %v77_v15  ;;  %902 = vmatprep.mubr.f32.mxu0 %v80_v16 }
  0x70   :  { %1063 = vmatprep.mubr.f32.mxu1 %v80_v16 }
  0x72   :  { %903 = vmatmul.mubr.f32.gmra.mrb[40].mxu0 %v79_v17 }
  0x73   :  { %1064 = vmatmul.mubr.f32.gmra.mrb[40].mxu1 %v79_v17  ;;  %908 = vmatprep.mubr.f32.mxu0 %v82_v18 }
  0x74   :  { %1069 = vmatprep.mubr.f32.mxu1 %v82_v18 }
  0x76   :  { %909 = vmatmul.mubr.f32.gmra.mrb[42].mxu0 %v81_v19 }
  0x77   :  { %1070 = vmatmul.mubr.f32.gmra.mrb[42].mxu1 %v81_v19  ;;  %914 = vmatprep.mubr.f32.mxu0 %v84_v20 }
  0x78   :  { %1075 = vmatprep.mubr.f32.mxu1 %v84_v20 }
  0x7a   :  { %915 = vmatmul.mubr.f32.gmra.mrb[44].mxu0 %v83_v21 }
  0x7b   :  { %1076 = vmatmul.mubr.f32.gmra.mrb[44].mxu1 %v83_v21  ;;  %920 = vmatprep.mubr.f32.mxu0 %v86_v22 }
  0x7c   :  { %1081 = vmatprep.mubr.f32.mxu1 %v86_v22 }
  0x7e   :  { %921 = vmatmul.mubr.f32.gmra.mrb[46].mxu0 %v85_v23 }
  0x7f   :  { %1082 = vmatmul.mubr.f32.gmra.mrb[46].mxu1 %v85_v23  ;;  %926 = vmatprep.mubr.f32.mxu0 %v88_v24 }
  0x80   :  { %1087 = vmatprep.mubr.f32.mxu1 %v88_v24 }
  0x82   :  { %927 = vmatmul.mubr.f32.gmra.mrb[48].mxu0 %v87_v25 }
  0x83   :  { %1088 = vmatmul.mubr.f32.gmra.mrb[48].mxu1 %v87_v25  ;;  %932 = vmatprep.mubr.f32.mxu0 %v90_v26 }
  0x84   :  { %1093 = vmatprep.mubr.f32.mxu1 %v90_v26 }
  0x86   :  { %933 = vmatmul.mubr.f32.gmra.mrb[50].mxu0 %v89_v27 }
  0x87   :  { %1094 = vmatmul.mubr.f32.gmra.mrb[50].mxu1 %v89_v27  ;;  %938 = vmatprep.mubr.f32.mxu0 %v92_v28 }
  0x88   :  { %1099 = vmatprep.mubr.f32.mxu1 %v92_v28 }
  0x8a   :  { %939 = vmatmul.mubr.f32.gmra.mrb[52].mxu0 %v91_v29 }
  0x8b   :  { %1100 = vmatmul.mubr.f32.gmra.mrb[52].mxu1 %v91_v29  ;;  %944 = vmatprep.mubr.f32.mxu0 %v94_v30 }
  0x8c   :  { %1105 = vmatprep.mubr.f32.mxu1 %v94_v30 }
  0x8e   :  { %945 = vmatmul.mubr.f32.gmra.mrb[54].mxu0 %v93_v31 }
  0x8f   :  { %1106 = vmatmul.mubr.f32.gmra.mrb[54].mxu1 %v93_v31  ;;  %950 = vmatprep.mubr.f32.mxu0 %v96_v32 }
  0x90   :  { %1111 = vmatprep.mubr.f32.mxu1 %v96_v32 }
  0x92   :  { %951 = vmatmul.mubr.f32.gmra.mrb[56].mxu0 %v95_v33 }
  0x93   :  { %1112 = vmatmul.mubr.f32.gmra.mrb[56].mxu1 %v95_v33  ;;  %956 = vmatprep.mubr.f32.mxu0 %v98_v34 }
  0x94   :  { %1117 = vmatprep.mubr.f32.mxu1 %v98_v34 }
  0x96   :  { %957 = vmatmul.mubr.f32.gmra.mrb[58].mxu0 %v97_v35 }
  0x97   :  { %1118 = vmatmul.mubr.f32.gmra.mrb[58].mxu1 %v97_v35  ;;  %962 = vmatprep.mubr.f32.mxu0 %v100_v36 }
  0x98   :  { %1123 = vmatprep.mubr.f32.mxu1 %v100_v36 }
  0x9a   :  { %963 = vmatmul.mubr.f32.gmra.mrb[60].mxu0 %v99_v37 }
  0x9b   :  { %1124 = vmatmul.mubr.f32.gmra.mrb[60].mxu1 %v99_v37  ;;  %968 = vmatprep.mubr.f32.mxu0 %v102_v38 }
  0x9c   :  { %1129 = vmatprep.mubr.f32.mxu1 %v102_v38 }
  0x9e   :  { %969 = vmatmul.mubr.f32.gmra.mrb[62].mxu0 %v101_v39 }
  0x9f   :  { %1130 = vmatmul.mubr.f32.gmra.mrb[62].mxu1 %v101_v39  ;;  %1264 = vmatprep.mubr.f32.mxu0 %v3492_v1 }
  0xa0   :  { %1341 = vmatprep.mubr.f32.mxu1 %v3492_v1 }
  0xf5   :  { %v2977_v40 = vpop.f32.mrb[0].mxu0 }
  0xf6   :  { %v2979_v41 = vpop.f32.mrb[0].mxu1  ;;  %v2981_v42 = vpop.f32.mrb[1].mxu0 }
  0xf7   :  { %v2983_v43 = vpop.f32.mrb[1].mxu1 }
  0xf9   :  { %v2985_v44 = vpop.f32.mrb[2].mxu0 }
  0xfa   :  { %v2987_v45 = vpop.f32.mrb[2].mxu1  ;;  %v2989_v46 = vpop.f32.mrb[3].mxu0 }
  0xfb   :  { %v2991_v47 = vpop.f32.mrb[3].mxu1 }
  0xfd   :  { %v2993_v48 = vpop.f32.mrb[4].mxu0 }
  0xfe   :  { %v2995_v49 = vpop.f32.mrb[4].mxu1  ;;  %v2997_v50 = vpop.f32.mrb[5].mxu0 }
  0xff   :  { %v2999_v51 = vpop.f32.mrb[5].mxu1 }
 0x101   :  { %v3001_v52 = vpop.f32.mrb[6].mxu0 }
 0x102   :  { %v3003_v53 = vpop.f32.mrb[6].mxu1  ;;  %v3005_v54 = vpop.f32.mrb[7].mxu0 }
 0x103   :  { %v3007_v55 = vpop.f32.mrb[7].mxu1 }
 0x105   :  { %v3009_v56 = vpop.f32.mrb[8].mxu0 }
 0x106   :  { %v3011_v57 = vpop.f32.mrb[8].mxu1  ;;  %v3013_v58 = vpop.f32.mrb[9].mxu0 }
 0x107   :  { %v3015_v59 = vpop.f32.mrb[9].mxu1 }
 0x109   :  { %v3017_v60 = vpop.f32.mrb[10].mxu0 }
 0x10a   :  { %v3019_v61 = vpop.f32.mrb[10].mxu1  ;;  %v3021_v62 = vpop.f32.mrb[11].mxu0 }
 0x10b   :  { %v3023_v63 = vpop.f32.mrb[11].mxu1 }
 0x10d   :  { %v3025_v0 = vpop.f32.mrb[12].mxu0 }
 0x10e   :  { %v3027_v8 = vpop.f32.mrb[12].mxu1  ;;  %v3029_v9 = vpop.f32.mrb[13].mxu0 }
 0x10f   :  { %v3031_v10 = vpop.f32.mrb[13].mxu1 }
 0x111   :  { %v3033_v11 = vpop.f32.mrb[14].mxu0 }
 0x112   :  { %v3035_v12 = vpop.f32.mrb[14].mxu1  ;;  %v3037_v13 = vpop.f32.mrb[15].mxu0 }
 0x113   :  { %v3039_v14 = vpop.f32.mrb[15].mxu1 }
 0x115   :  { %v3041_v15 = vpop.f32.mrb[16].mxu0 }
 0x116   :  { %v3043_v16 = vpop.f32.mrb[16].mxu1  ;;  %v3045_v17 = vpop.f32.mrb[17].mxu0 }
 0x117   :  { %v3047_v18 = vpop.f32.mrb[17].mxu1 }
 0x119   :  { %v3049_v19 = vpop.f32.mrb[18].mxu0 }
 0x11a   :  { %v3051_v20 = vpop.f32.mrb[18].mxu1  ;;  %v3053_v21 = vpop.f32.mrb[19].mxu0 }
 0x11b   :  { %v3055_v22 = vpop.f32.mrb[19].mxu1 }
 0x11d   :  { %v3057_v23 = vpop.f32.mrb[20].mxu0 }
 0x11e   :  { %v3059_v24 = vpop.f32.mrb[20].mxu1  ;;  %v3061_v25 = vpop.f32.mrb[21].mxu0 }
 0x11f   :  { %v3063_v26 = vpop.f32.mrb[21].mxu1 }
 0x121   :  { %v3065_v27 = vpop.f32.mrb[22].mxu0 }
 0x122   :  { %v3067_v28 = vpop.f32.mrb[22].mxu1  ;;  %v3069_v29 = vpop.f32.mrb[23].mxu0 }
 0x123   :  { %v3071_v30 = vpop.f32.mrb[23].mxu1 }
 0x125   :  { %v3073_v31 = vpop.f32.mrb[24].mxu0 }
 0x126   :  { %v3075_v32 = vpop.f32.mrb[24].mxu1  ;;  %v3077_v33 = vpop.f32.mrb[25].mxu0 }
 0x127   :  { %3508 = vst [vmem:[#allocation17_spill] sm:$0xff] %v3075_v32  ;;  %3509 = vst [vmem:[#allocation18_spill] sm:$0xff] %v3077_v33  ;;  %v3079_v34 = vpop.f32.mrb[25].mxu1 }
 0x128   :  { %3510 = vst [vmem:[#allocation19_spill] sm:$0xff] %v3079_v34 }
 0x129   :  { %v3081_v35 = vpop.f32.mrb[26].mxu0 }
 0x12a   :  { %3511 = vst [vmem:[#allocation20_spill] sm:$0xff] %v3081_v35  ;;  %v3083_v36 = vpop.f32.mrb[26].mxu1  ;;  %v3085_v37 = vpop.f32.mrb[27].mxu0 }
 0x12b   :  { %3512 = vst [vmem:[#allocation21_spill] sm:$0xff] %v3083_v36  ;;  %3513 = vst [vmem:[#allocation22_spill] sm:$0xff] %v3085_v37  ;;  %v3087_v38 = vpop.f32.mrb[27].mxu1 }
 0x12c   :  { %3514 = vst [vmem:[#allocation23_spill] sm:$0xff] %v3087_v38 }
 0x12d   :  { %v3089_v39 = vpop.f32.mrb[28].mxu0 }
 0x12e   :  { %3515 = vst [vmem:[#allocation24_spill] sm:$0xff] %v3089_v39  ;;  %v3091_v1 = vpop.f32.mrb[28].mxu1  ;;  %v3093_v7 = vpop.f32.mrb[29].mxu0 }
 0x12f   :  { %3516 = vst [vmem:[#allocation25_spill] sm:$0xff] %v3091_v1  ;;  %3517 = vst [vmem:[#allocation26_spill] sm:$0xff] %v3093_v7  ;;  %v3095_v2 = vpop.f32.mrb[29].mxu1 }
 0x130   :  { %3518 = vst [vmem:[#allocation27_spill] sm:$0xff] %v3095_v2 }
 0x131   :  { %v3097_v4 = vpop.f32.mrb[30].mxu0 }
 0x132   :  { %3519 = vst [vmem:[#allocation28_spill] sm:$0xff] %v3097_v4  ;;  %v3099_v3 = vpop.f32.mrb[30].mxu1  ;;  %v3101_v6 = vpop.f32.mrb[31].mxu0 }
 0x133   :  { %3520 = vst [vmem:[#allocation29_spill] sm:$0xff] %v3099_v3  ;;  %3521 = vst [vmem:[#allocation30_spill] sm:$0xff] %v3101_v6  ;;  %v3103_v5 = vpop.f32.mrb[31].mxu1 }
 0x134   :  { %3522 = vst [vmem:[#allocation31_spill] sm:$0xff] %v3103_v5 }
 0x135   :  { %v880_v36 = vpop.f32.mrb[32].mxu0 }
 0x136   :  { %v1136_v37 = vmul.f32 %v880_v36, %v2977_v40  ;;  %v1041_v38 = vpop.f32.mrb[32].mxu1  ;;  %v882_v35 = vpop.f32.mrb[33].mxu0 }
 0x137   :  { %v1138_v39 = vmul.f32 %v1041_v38, %v2979_v41  ;;  %v1137_v1 = vmul.f32 %v882_v35, %v2981_v42  ;;  %v1043_v7 = vpop.f32.mrb[33].mxu1 }
 0x138   :  { %v1139_v2 = vmul.f32 %v1043_v7, %v2983_v43 }
 0x139   :  { %v886_v34 = vpop.f32.mrb[34].mxu0 }
 0x13a   :  { %v1140_v4 = vmul.f32 %v886_v34, %v2985_v44  ;;  %v1047_v3 = vpop.f32.mrb[34].mxu1  ;;  %v888_v33 = vpop.f32.mrb[35].mxu0 }
 0x13b   :  { %v1142_v6 = vmul.f32 %v1047_v3, %v2987_v45  ;;  %v1141_v5 = vmul.f32 %v888_v33, %v2989_v46  ;;  %v1049_v32 = vpop.f32.mrb[35].mxu1 }
 0x13c   :  { %v3112_v40 = vpack.c.bf16 %v1140_v4, %v1136_v37  ;;  %v1143_v36 = vmul.f32 %v1049_v32, %v2991_v47 }
 0x13d   :  { %v3115_v41 = vpack.c.bf16 %v1142_v6, %v1138_v39  ;;  %v3117_v42 = vpack.c.bf16 %v1141_v5, %v1137_v1  ;;  %v892_v35 = vpop.f32.mrb[36].mxu0 }
 0x13e   :  { %v3119_v7 = vpack.c.bf16 %v1143_v36, %v1139_v2  ;;  %v1144_v43 = vmul.f32 %v892_v35, %v2993_v48  ;;  %v1053_v44 = vpop.f32.mrb[36].mxu1  ;;  %v894_v34 = vpop.f32.mrb[37].mxu0 }
 0x13f   :  { %v1146_v3 = vmul.f32 %v1053_v44, %v2995_v49  ;;  %v1145_v45 = vmul.f32 %v894_v34, %v2997_v50  ;;  %v1055_v46 = vpop.f32.mrb[37].mxu1  ;;  %2137 = vmatprep.subr.bf16.mxu0 %v3117_v42 }
 0x140   :  { %v1147_v4 = vmul.f32 %v1055_v46, %v2999_v51  ;;  %2169 = vmatprep.subr.bf16.mxu1 %v3119_v7  ;;  %2139 = vmatpush1.bf16.msra.mxu0 %v3112_v40 }
 0x141   :  { %2171 = vmatpush1.bf16.msra.mxu1 %v3115_v41  ;;  %v898_v1 = vpop.f32.mrb[38].mxu0 }
 0x142   :  { %v1148_v2 = vmul.f32 %v898_v1, %v3001_v52  ;;  %v1059_v5 = vpop.f32.mrb[38].mxu1  ;;  %v900_v6 = vpop.f32.mrb[39].mxu0 }
 0x143   :  { %v1150_v47 = vmul.f32 %v1059_v5, %v3003_v53  ;;  %v1149_v48 = vmul.f32 %v900_v6, %v3005_v54  ;;  %v1061_v49 = vpop.f32.mrb[39].mxu1 }
 0x144   :  { %v3132_v50 = vpack.c.bf16 %v1148_v2, %v1144_v43  ;;  %v1151_v51 = vmul.f32 %v1061_v49, %v3007_v55 }
 0x145   :  { %v3135_v32 = vpack.c.bf16 %v1150_v47, %v1146_v3  ;;  %v3137_v33 = vpack.c.bf16 %v1149_v48, %v1145_v45  ;;  %v904_v37 = vpop.f32.mrb[40].mxu0 }
 0x146   :  { %v3139_v38 = vpack.c.bf16 %v1151_v51, %v1147_v4  ;;  %v1152_v52 = vmul.f32 %v904_v37, %v3009_v56  ;;  %v1065_v39 = vpop.f32.mrb[40].mxu1  ;;  %v906_v36 = vpop.f32.mrb[41].mxu0 }
 0x147   :  { %v1154_v53 = vmul.f32 %v1065_v39, %v3011_v57  ;;  %v1153_v54 = vmul.f32 %v906_v36, %v3013_v58  ;;  %v1067_v35 = vpop.f32.mrb[41].mxu1  ;;  %2141 = vmatprep.subr.bf16.mxu0 %v3137_v33 }
 0x148   :  { %v1155_v55 = vmul.f32 %v1067_v35, %v3015_v59  ;;  %2173 = vmatprep.subr.bf16.mxu1 %v3139_v38  ;;  %2143 = vmatpush1.bf16.msra.mxu0 %v3132_v50 }
 0x149   :  { %2175 = vmatpush1.bf16.msra.mxu1 %v3135_v32  ;;  %v910_v43 = vpop.f32.mrb[42].mxu0 }
 0x14a   :  { %v1156_v56 = vmul.f32 %v910_v43, %v3017_v60  ;;  %v1071_v44 = vpop.f32.mrb[42].mxu1  ;;  %v912_v34 = vpop.f32.mrb[43].mxu0 }
 0x14b   :  { %v1158_v57 = vmul.f32 %v1071_v44, %v3019_v61  ;;  %v1157_v58 = vmul.f32 %v912_v34, %v3021_v62  ;;  %v1073_v3 = vpop.f32.mrb[43].mxu1 }
 0x14c   :  { %v3152_v45 = vpack.c.bf16 %v1156_v56, %v1152_v52  ;;  %v1159_v59 = vmul.f32 %v1073_v3, %v3023_v63 }
 0x14d   :  { %v3155_v46 = vpack.c.bf16 %v1158_v57, %v1154_v53  ;;  %v3157_v4 = vpack.c.bf16 %v1157_v58, %v1153_v54  ;;  %v916_v1 = vpop.f32.mrb[44].mxu0 }
 0x14e   :  { %v3159_v2 = vpack.c.bf16 %v1159_v59, %v1155_v55  ;;  %v1160_v60 = vmul.f32 %v916_v1, %v3025_v0  ;;  %v1077_v5 = vpop.f32.mrb[44].mxu1  ;;  %v918_v6 = vpop.f32.mrb[45].mxu0 }
 0x14f   :  { %v1162_v61 = vmul.f32 %v1077_v5, %v3027_v8  ;;  %v1161_v62 = vmul.f32 %v918_v6, %v3029_v9  ;;  %v1079_v47 = vpop.f32.mrb[45].mxu1  ;;  %2145 = vmatprep.subr.bf16.mxu0 %v3157_v4 }
 0x150   :  { %v1163_v63 = vmul.f32 %v1079_v47, %v3031_v10  ;;  %2177 = vmatprep.subr.bf16.mxu1 %v3159_v2  ;;  %2147 = vmatpush1.bf16.msra.mxu0 %v3152_v45 }
 0x151   :  { %2179 = vmatpush1.bf16.msra.mxu1 %v3155_v46  ;;  %v922_v48 = vpop.f32.mrb[46].mxu0 }
 0x152   :  { %v1164_v0 = vmul.f32 %v922_v48, %v3033_v11  ;;  %v1083_v49 = vpop.f32.mrb[46].mxu1  ;;  %v924_v51 = vpop.f32.mrb[47].mxu0 }
 0x153   :  { %v1166_v8 = vmul.f32 %v1083_v49, %v3035_v12  ;;  %v1165_v9 = vmul.f32 %v924_v51, %v3037_v13  ;;  %v1085_v37 = vpop.f32.mrb[47].mxu1 }
 0x154   :  { %v3172_v52 = vpack.c.bf16 %v1164_v0, %v1160_v60  ;;  %v1167_v10 = vmul.f32 %v1085_v37, %v3039_v14 }
 0x155   :  { %v3175_v39 = vpack.c.bf16 %v1166_v8, %v1162_v61  ;;  %v3177_v36 = vpack.c.bf16 %v1165_v9, %v1161_v62  ;;  %v928_v53 = vpop.f32.mrb[48].mxu0 }
 0x156   :  { %v3179_v54 = vpack.c.bf16 %v1167_v10, %v1163_v63  ;;  %v1168_v11 = vmul.f32 %v928_v53, %v3041_v15  ;;  %v1089_v35 = vpop.f32.mrb[48].mxu1  ;;  %v930_v55 = vpop.f32.mrb[49].mxu0  ;;  %v3523_v53 = vld [vmem:[#allocation17_spill] sm:$0xff] }
 0x157   :  { %v1170_v12 = vmul.f32 %v1089_v35, %v3043_v16  ;;  %v1169_v13 = vmul.f32 %v930_v55, %v3045_v17  ;;  %v1091_v43 = vpop.f32.mrb[49].mxu1  ;;  %2149 = vmatprep.subr.bf16.mxu0 %v3177_v36  ;;  %v3525_v55 = vld [vmem:[#allocation19_spill] sm:$0xff] }
 0x158   :  { %v1171_v14 = vmul.f32 %v1091_v43, %v3047_v18  ;;  %2181 = vmatprep.subr.bf16.mxu1 %v3179_v54  ;;  %2151 = vmatpush1.bf16.msra.mxu0 %v3172_v52 }
 0x159   :  { %2183 = vmatpush1.bf16.msra.mxu1 %v3175_v39  ;;  %v934_v56 = vpop.f32.mrb[50].mxu0 }
 0x15a   :  { %v1172_v15 = vmul.f32 %v934_v56, %v3049_v19  ;;  %v1095_v44 = vpop.f32.mrb[50].mxu1  ;;  %v936_v34 = vpop.f32.mrb[51].mxu0  ;;  %v3527_v56 = vld [vmem:[#allocation21_spill] sm:$0xff] }
 0x15b   :  { %v1174_v16 = vmul.f32 %v1095_v44, %v3051_v20  ;;  %v1173_v17 = vmul.f32 %v936_v34, %v3053_v21  ;;  %v1097_v57 = vpop.f32.mrb[51].mxu1  ;;  %v3528_v44 = vld [vmem:[#allocation22_spill] sm:$0xff] }
 0x15c   :  { %v3192_v58 = vpack.c.bf16 %v1172_v15, %v1168_v11  ;;  %v1175_v18 = vmul.f32 %v1097_v57, %v3055_v22  ;;  %v3524_v11 = vld [vmem:[#allocation18_spill] sm:$0xff]  ;;  %v3529_v57 = vld [vmem:[#allocation23_spill] sm:$0xff] }
 0x15d   :  { %v3195_v3 = vpack.c.bf16 %v1174_v16, %v1170_v12  ;;  %v3197_v59 = vpack.c.bf16 %v1173_v17, %v1169_v13  ;;  %v940_v1 = vpop.f32.mrb[52].mxu0  ;;  %v3526_v13 = vld [vmem:[#allocation20_spill] sm:$0xff] }
 0x15e   :  { %v3199_v60 = vpack.c.bf16 %v1175_v18, %v1171_v14  ;;  %v1176_v19 = vmul.f32 %v940_v1, %v3057_v23  ;;  %v1101_v5 = vpop.f32.mrb[52].mxu1  ;;  %v942_v6 = vpop.f32.mrb[53].mxu0 }
 0x15f   :  { %v1178_v20 = vmul.f32 %v1101_v5, %v3059_v24  ;;  %v1177_v21 = vmul.f32 %v942_v6, %v3061_v25  ;;  %v1103_v61 = vpop.f32.mrb[53].mxu1  ;;  %2153 = vmatprep.subr.bf16.mxu0 %v3197_v59 }
 0x160   :  { %v1179_v22 = vmul.f32 %v1103_v61, %v3063_v26  ;;  %2185 = vmatprep.subr.bf16.mxu1 %v3199_v60  ;;  %2155 = vmatpush1.bf16.msra.mxu0 %v3192_v58 }
 0x161   :  { %2187 = vmatpush1.bf16.msra.mxu1 %v3195_v3  ;;  %v946_v62 = vpop.f32.mrb[54].mxu0 }
 0x162   :  { %v1180_v23 = vmul.f32 %v946_v62, %v3065_v27  ;;  %v1107_v47 = vpop.f32.mrb[54].mxu1  ;;  %v948_v63 = vpop.f32.mrb[55].mxu0  ;;  %v3531_v62 = vld [vmem:[#allocation25_spill] sm:$0xff] }
 0x163   :  { %v1182_v24 = vmul.f32 %v1107_v47, %v3067_v28  ;;  %v1181_v25 = vmul.f32 %v948_v63, %v3069_v29  ;;  %v1109_v48 = vpop.f32.mrb[55].mxu1  ;;  %v3532_v47 = vld [vmem:[#allocation26_spill] sm:$0xff] }
 0x164   :  { %v3212_v0 = vpack.c.bf16 %v1180_v23, %v1176_v19  ;;  %v1183_v26 = vmul.f32 %v1109_v48, %v3071_v30 }
 0x165   :  { %v3215_v49 = vpack.c.bf16 %v1182_v24, %v1178_v20  ;;  %v3217_v51 = vpack.c.bf16 %v1181_v25, %v1177_v21  ;;  %v952_v8 = vpop.f32.mrb[56].mxu0  ;;  %v3530_v20 = vld [vmem:[#allocation24_spill] sm:$0xff]  ;;  %v3533_v25 = vld [vmem:[#allocation27_spill] sm:$0xff] }
 0x166   :  { %v3219_v9 = vpack.c.bf16 %v1183_v26, %v1179_v22  ;;  %v1184_v27 = vmul.f32 %v952_v8, %v3073_v31  ;;  %v1113_v37 = vpop.f32.mrb[56].mxu1  ;;  %v954_v10 = vpop.f32.mrb[57].mxu0  ;;  %v3534_v8 = vld [vmem:[#allocation28_spill] sm:$0xff] }
 0x167   :  { %v1186_v28 = vmul.f32 %v1113_v37, %v3523_v53  ;;  %v1185_v29 = vmul.f32 %v954_v10, %v3524_v11  ;;  %v1115_v35 = vpop.f32.mrb[57].mxu1  ;;  %2157 = vmatprep.subr.bf16.mxu0 %v3217_v51  ;;  %v3535_v53 = vld [vmem:[#allocation29_spill] sm:$0xff]  ;;  %v3536_v11 = vld [vmem:[#allocation30_spill] sm:$0xff] }
 0x168   :  { %v1187_v30 = vmul.f32 %v1115_v35, %v3525_v55  ;;  %2189 = vmatprep.subr.bf16.mxu1 %v3219_v9  ;;  %2159 = vmatpush1.bf16.msra.mxu0 %v3212_v0 }
 0x169   :  { %2191 = vmatpush1.bf16.msra.mxu1 %v3215_v49  ;;  %v958_v12 = vpop.f32.mrb[58].mxu0 }
 0x16a   :  { %v1188_v31 = vmul.f32 %v958_v12, %v3526_v13  ;;  %v1119_v43 = vpop.f32.mrb[58].mxu1  ;;  %v960_v14 = vpop.f32.mrb[59].mxu0 }
 0x16b   :  { %v1190_v15 = vmul.f32 %v1119_v43, %v3527_v56  ;;  %v1189_v34 = vmul.f32 %v960_v14, %v3528_v44  ;;  %v1121_v16 = vpop.f32.mrb[59].mxu1  ;;  %v53_v14 = vld [vmem:[%s3487_s3] sm:$0xff]  ;;  %v3538_v56 = vmov 0.0  }
 0x16c   :  { %v3232_v17 = vpack.c.bf16 %v1188_v31, %v1184_v27  ;;  %v1191_v18 = vmul.f32 %v1121_v16, %v3529_v57  ;;  %49 = vst.msk [vmem:[#allocation3] sm:$0xff] %vm46_vm0, %v3538_v56  ;;  %50 = vst.msk [vmem:[#allocation3 + $0x8] sm:$0xff] %vm46_vm0, %v3538_v56 }
 0x16d   :  { %v3235_v1 = vpack.c.bf16 %v1190_v15, %v1186_v28  ;;  %v2160_v19 = vpack.c.bf16 %v1189_v34, %v1185_v29  ;;  %v964_v5 = vpop.f32.mrb[60].mxu0  ;;  %v54_v15 = vld [vmem:[%s3487_s3 + $0x8] sm:$0xff] }
 0x16e   :  { %v2192_v6 = vpack.c.bf16 %v1191_v18, %v1187_v30  ;;  %v1192_v21 = vmul.f32 %v964_v5, %v3530_v20  ;;  %v1125_v61 = vpop.f32.mrb[60].mxu1  ;;  %v966_v22 = vpop.f32.mrb[61].mxu0  ;;  %v3537_v30 = vld [vmem:[#allocation31_spill] sm:$0xff]  ;;  %v2328_v20 = vmov 0  }
 0x16f   :  { %v1194_v23 = vmul.f32 %v1125_v61, %v3531_v62  ;;  %v1193_v63 = vmul.f32 %v966_v22, %v3532_v47  ;;  %v1127_v24 = vpop.f32.mrb[61].mxu1  ;;  %2161 = vmatprep.subr.bf16.mxu0 %v2160_v19  ;;  %2242 = vset.pattern.permute.xlu1 %v2328_v20 }
 0x170   :  { %v1195_v48 = vmul.f32 %v1127_v24, %v3533_v25  ;;  %2193 = vmatprep.subr.bf16.mxu1 %v2192_v6  ;;  %2163 = vmatpush1.bf16.msra.mxu0 %v3232_v17 }
 0x171   :  { %2195 = vmatpush1.bf16.msra.mxu1 %v3235_v1  ;;  %v970_v26 = vpop.f32.mrb[62].mxu0  ;;  %2243 = vset.pattern.permute.xlu0 %v2328_v20  ;;  %v1637_v20 = vld [vmem:[%s3490_s6 + $0x38] sm:$0xff] }
 0x172   :  { %v1196_v27 = vmul.f32 %v970_v26, %v3534_v8  ;;  %v1131_v37 = vpop.f32.mrb[62].mxu1  ;;  %v972_v10 = vpop.f32.mrb[63].mxu0 }
 0x173   :  { %v1198_v28 = vmul.f32 %v1131_v37, %v3535_v53  ;;  %v1197_v29 = vmul.f32 %v972_v10, %v3536_v11  ;;  %v1133_v35 = vpop.f32.mrb[63].mxu1 }
 0x174   :  { %v2166_v55 = vpack.c.bf16 %v1196_v27, %v1192_v21  ;;  %v1199_v12 = vmul.f32 %v1133_v35, %v3537_v30 }
 0x175   :  { %v2198_v13 = vpack.c.bf16 %v1198_v28, %v1194_v23  ;;  %v2164_v31 = vpack.c.bf16 %v1197_v29, %v1193_v63 }
 0x176   :  { %v2196_v43 = vpack.c.bf16 %v1199_v12, %v1195_v48 }
 0x177   :  { %2165 = vmatprep.subr.bf16.mxu0 %v2164_v31 }
 0x178   :  { %2197 = vmatprep.subr.bf16.mxu1 %v2196_v43  ;;  %2167 = vmatpush1.bf16.msra.mxu0 %v2166_v55 }
 0x179   :  { %2199 = vmatpush1.bf16.msra.mxu1 %v2198_v13  ;;  %1517 = vmatprep.subr.bf16.mxu0 %v3117_v42  ;;  %v3539_v42 = vld [vmem:[#allocation14_spill] sm:$0xff] }
 0x17a   :  { %1558 = vmatprep.subr.bf16.mxu1 %v3119_v7 }
 0x17b   :  { %1265 = vmatmul.mubr.f32.vlgmr.msra.gmra.mrb[64].mxu0 %v53_v14 }
 0x17c   :  { %1342 = vmatmul.mubr.f32.vlgmr.msra.gmra.mrb[64].mxu1 %v53_v14  ;;  %1270 = vmatprep.mubr.f32.mxu0 %v3538_v56 }
 0x17d   :  { %1347 = vmatprep.mubr.f32.mxu1 %v3538_v56 }
 0x17f   :  { %1271 = vmatmul.mubr.f32.gmra.mrb[66].mxu0 %v54_v15 }
 0x180   :  { %1348 = vmatmul.mubr.f32.gmra.mrb[66].mxu1 %v54_v15 }
 0x181   :  { %1518 = vmatpush1.bf16.xpose.msra.mxu0 %v3112_v40  ;;  %v2327_v40 = vmov -1e+30  }
 0x182   :  { %1559 = vmatpush1.bf16.xpose.msra.mxu1 %v3115_v41  ;;  %1519 = vmatprep.subr.bf16.mxu0 %v3137_v33  ;;  %47 = vst.msk [vmem:[#allocation2] sm:$0xff] %vm46_vm0, %v2327_v40  ;;  %48 = vst.msk [vmem:[#allocation2 + $0x8] sm:$0xff] %vm46_vm0, %v2327_v40  ;;  %v105_v41 = vld [vmem:[%s3486_s2] sm:$0xf]  ;;  %v3541_v33 = vld [vmem:[#allocation12_spill] sm:$0xff] }
 0x183   :  { %1560 = vmatprep.subr.bf16.mxu1 %v3139_v38  ;;  %v3291_v7 = vrot.slane %v105_v41, %v3539_v42  ;;  %v3297_v38 = vrot.slane %v105_v41, %v3541_v33 }
 0x189   :  { %1520 = vmatpush1.bf16.xpose.msra.mxu0 %v3132_v50  ;;  %v3540_v50 = vld [vmem:[#allocation15_spill] sm:$0xff]  ;;  %v3342_v21 = vld [vmem:[#allocation2] sm:$0xff]  ;;  %v3347_v62 = vld [vmem:[#allocation2 + $0x8] sm:$0xff] }
 0x18a   :  { %1561 = vmatpush1.bf16.xpose.msra.mxu1 %v3135_v32  ;;  %1521 = vmatprep.subr.bf16.mxu0 %v3157_v4  ;;  %v3294_v32 = vrot.slane %v105_v41, %v3540_v50  ;;  %v3543_v4 = vld [vmem:[#allocation11_spill] sm:$0xff] }
 0x18b   :  { %1562 = vmatprep.subr.bf16.mxu1 %v3159_v2  ;;  %vm1370_vm9 = vcmp.eq.s32.totalorder %v3543_v4, %v3291_v7  ;;  %vm1371_vm11 = vcmp.eq.s32.totalorder %v3543_v4, %v3297_v38 }
 0x18c   :  { %vm1372_vm10 = vcmp.eq.s32.totalorder %v3543_v4, %v3294_v32 }
 0x191   :  { %1522 = vmatpush1.bf16.xpose.msra.mxu0 %v3152_v45  ;;  %v3542_v45 = vld [vmem:[#allocation13_spill] sm:$0xff] }
 0x192   :  { %1563 = vmatpush1.bf16.xpose.msra.mxu1 %v3155_v46  ;;  %1523 = vmatprep.subr.bf16.mxu0 %v3177_v36  ;;  %v3300_v46 = vrot.slane %v105_v41, %v3542_v45 }
 0x193   :  { %1564 = vmatprep.subr.bf16.mxu1 %v3179_v54 }
 0x194   :  { %vm1373_vm12 = vcmp.eq.s32.totalorder %v3543_v4, %v3300_v46 }
 0x199   :  { %1524 = vmatpush1.bf16.xpose.msra.mxu0 %v3172_v52 }
 0x19a   :  { %1565 = vmatpush1.bf16.xpose.msra.mxu1 %v3175_v39  ;;  %1525 = vmatprep.subr.bf16.mxu0 %v3197_v59  ;;  %v3544_v59 = vld [vmem:[#allocation16_spill] sm:$0xff] }
 0x19b   :  { %1566 = vmatprep.subr.bf16.mxu1 %v3199_v60  ;;  %vm1374_vm13 = vcmp.eq.s32.totalorder %v3544_v59, %v3291_v7  ;;  %vm1376_vm14 = vcmp.eq.s32.totalorder %v3544_v59, %v3294_v32  ;;  %vm1375_vm15 = vcmp.eq.s32.totalorder %v3544_v59, %v3297_v38  ;;  %vm1377_vm1 = vcmp.eq.s32.totalorder %v3544_v59, %v3300_v46  ;;  %v1631_v32 = vld [vmem:[%s3490_s6 + $0x8] sm:$0xff]  ;;  %v1633_v46 = vld [vmem:[%s3490_s6 + $0x18] sm:$0xff] }
 0x19c   :  { %vm3377_vm2 = vmpackc.low %vm1375_vm15, %vm1371_vm11 }
 0x19d   :  { %vm1938_vm3 = vmpackc.low %vm1374_vm13, %vm1370_vm9 }
 0x19e   :  { %vm1941_vm4 = vmpackc.low %vm1377_vm1, %vm1373_vm12 }
 0x19f   :  { %vm1944_vm5 = vmpackc.low %vm1376_vm14, %vm1372_vm10 }
 0x1a1   :  { %1526 = vmatpush1.bf16.xpose.msra.mxu0 %v3192_v58 }
 0x1a2   :  { %1567 = vmatpush1.bf16.xpose.msra.mxu1 %v3195_v3  ;;  %1527 = vmatprep.subr.bf16.mxu0 %v3217_v51 }
 0x1a3   :  { %1568 = vmatprep.subr.bf16.mxu1 %v3219_v9 }
 0x1a9   :  { %1528 = vmatpush1.bf16.xpose.msra.mxu0 %v3212_v0 }
 0x1aa   :  { %1569 = vmatpush1.bf16.xpose.msra.mxu1 %v3215_v49  ;;  %1529 = vmatprep.subr.bf16.mxu0 %v2160_v19 }
 0x1ab   :  { %1570 = vmatprep.subr.bf16.mxu1 %v2192_v6 }
 0x1b1   :  { %1530 = vmatpush1.bf16.xpose.msra.mxu0 %v3232_v17 }
 0x1b2   :  { %1571 = vmatpush1.bf16.xpose.msra.mxu1 %v3235_v1  ;;  %1531 = vmatprep.subr.bf16.mxu0 %v2164_v31 }
 0x1b3   :  { %1572 = vmatprep.subr.bf16.mxu1 %v2196_v43 }
 0x1b9   :  { %1532 = vmatpush1.bf16.xpose.msra.mxu0 %v2166_v55 }
 0x1ba   :  { %1573 = vmatpush1.bf16.xpose.msra.mxu1 %v2198_v13 }
 0x24e   :  { %v1266_v2 = vpop.f32.mrb[64].mxu0 }
 0x24f   :  { %v1378_v52 = vsel %vm1370_vm9, %v1266_v2, -1e+30  ;;  %v1343_v39 = vpop.f32.mrb[64].mxu1  ;;  %v1268_v36 = vpop.f32.mrb[65].mxu0 }
 0x250   :  { %v1380_v54 = vsel %vm1372_vm10, %v1343_v39, -1e+30  ;;  %v1379_v58 = vsel %vm1371_vm11, %v1268_v36, -1e+30  ;;  %v1345_v3 = vpop.f32.mrb[65].mxu1 }
 0x251   :  { %v1388_v60 = vmax.f32 %v1378_v52, %v1380_v54  ;;  %v1381_v0 = vsel %vm1373_vm12, %v1345_v3, -1e+30 }
 0x252   :  { %v1389_v49 = vmax.f32 %v1379_v58, %v1381_v0  ;;  %v1272_v51 = vpop.f32.mrb[66].mxu0 }
 0x253   :  { %v1382_v9 = vsel %vm1374_vm13, %v1272_v51, -1e+30  ;;  %v1349_v44 = vpop.f32.mrb[66].mxu1  ;;  %v1274_v34 = vpop.f32.mrb[67].mxu0 }
 0x254   :  { %v1384_v16 = vsel %vm1376_vm14, %v1349_v44, -1e+30  ;;  %v1383_v17 = vsel %vm1375_vm15, %v1274_v34, -1e+30  ;;  %v1351_v57 = vpop.f32.mrb[67].mxu1  ;;  %v1390_v18 = vmax.f32 %v1388_v60, %v1389_v49 }
 0x255   :  { %v1393_v1 = vmax.f32 %v1382_v9, %v1384_v16  ;;  %v1385_v19 = vsel %vm1377_vm1, %v1351_v57, -1e+30  ;;  %v1632_v57 = vld [vmem:[%s3490_s6 + $0x10] sm:$0xff] }
 0x256   :  { %v1394_v5 = vmax.f32 %v1383_v17, %v1385_v19  ;;  %1391 = vmax.xlane.f32.xlu0 %v1390_v18  ;;  %v2204_v59 = vpack.c.bf16 %v1633_v46, %v1632_v57 }
 0x258   :  { %v1395_v6 = vmax.f32 %v1393_v1, %v1394_v5  ;;  %v1634_v1 = vld [vmem:[%s3490_s6 + $0x20] sm:$0xff] }
 0x25a   :  { %1396 = vmax.xlane.f32.xlu0 %v1395_v6  ;;  %v1636_v6 = vld [vmem:[%s3490_s6 + $0x30] sm:$0xff] }
 0x2e3   :  { %v1392_v61 = vpop.xlane.xlu0 %1391 }
 0x2e4   :  { %v3345_v22 = vmax.f32 %v3342_v21, %v1392_v61  ;;  %v2212_v61 = vpack.c.bf16 %v1637_v20, %v1636_v6 }
 0x2e6   :  { %v1400_v23 = vsub.f32 %v3342_v21, %v3345_v22  ;;  %1603 = vst.msk [vmem:[#allocation2] sm:$0xff] %vm46_vm0, %v3345_v22  ;;  %1408 = vperm.xlu1 %2242, %v3345_v22  }
 0x2e7   :  { %v1397_v47 = vpop.xlane.xlu0 %1396 }
 0x2e8   :  { %v3355_v63 = vmax.f32 %v3347_v62, %v1397_v47  ;;  %v1402_v47 = vmul.f32 1.442695, %v1400_v23  ;;  %v1639_v23 = vld [vmem:[%s3490_s6 + $0x48] sm:$0xff] }
 0x2ea   :  { %v1401_v24 = vsub.f32 %v3347_v62, %v3355_v63  ;;  %1604 = vst.msk [vmem:[#allocation2 + $0x8] sm:$0xff] %vm46_vm0, %v3355_v63  ;;  %1413 = vperm.xlu1 %2242, %v3355_v63   ;;  %v1638_v62 = vld [vmem:[%s3490_s6 + $0x40] sm:$0xff] }
 0x365   :  { %v1409_v25 = vpop.permute.xlu1 %1408 }
 0x366   :  { %v1416_v48 = vsub.f32 %v1378_v52, %v1409_v25  ;;  %v1417_v26 = vsub.f32 %v1379_v58, %v1409_v25  ;;  %v1418_v8 = vsub.f32 %v1380_v54, %v1409_v25  ;;  %v1419_v27 = vsub.f32 %v1381_v0, %v1409_v25 }
 0x367   :  { %v1404_v25 = vmul.f32 1.442695, %v1401_v24  ;;  %v2216_v24 = vpack.c.bf16 %v1639_v23, %v1638_v62 }
 0x368   :  { %v1424_v37 = vmul.f32 1.442695, %v1416_v48  ;;  %v1426_v10 = vmul.f32 1.442695, %v1417_v26  ;;  %v1428_v53 = vmul.f32 1.442695, %v1418_v8 }
 0x369   :  { %v1430_v28 = vmul.f32 1.442695, %v1419_v27  ;;  %v1414_v11 = vpop.permute.xlu1 %1413  ;;  %v1448_v26 = vld [vmem:[#allocation3] sm:$0xff] }
 0x36a   :  { %2244 = vpow2.f32 %v1424_v37  ;;  %v1420_v29 = vsub.f32 %v1382_v9, %v1414_v11  ;;  %v1421_v35 = vsub.f32 %v1383_v17, %v1414_v11  ;;  %v1422_v55 = vsub.f32 %v1384_v16, %v1414_v11  ;;  %v1630_v17 = vld [vmem:[%s3490_s6] sm:$0xff] }
 0x36b   :  { %2246 = vpow2.f32 %v1426_v10  ;;  %v1423_v30 = vsub.f32 %v1385_v19, %v1414_v11  ;;  %v2200_v18 = vpack.c.bf16 %v1631_v32, %v1630_v17  ;;  %v1635_v19 = vld [vmem:[%s3490_s6 + $0x28] sm:$0xff]  ;;  %v1449_v10 = vld [vmem:[#allocation3 + $0x8] sm:$0xff] }
 0x36c   :  { %2248 = vpow2.f32 %v1428_v53  ;;  %v1432_v12 = vmul.f32 1.442695, %v1420_v29  ;;  %v1434_v13 = vmul.f32 1.442695, %v1421_v35  ;;  %v1436_v31 = vmul.f32 1.442695, %v1422_v55 }
 0x36d   :  { %2250 = vpow2.f32 %v1430_v28  ;;  %v1438_v43 = vmul.f32 1.442695, %v1423_v30  ;;  %2201 = vmatprep.subr.bf16.mxu0 %v2200_v18  ;;  %v2208_v5 = vpack.c.bf16 %v1635_v19, %v1634_v1  ;;  %v1640_v55 = vld [vmem:[%s3490_s6 + $0x50] sm:$0xff]  ;;  %v1641_v30 = vld [vmem:[%s3490_s6 + $0x58] sm:$0xff] }
 0x36e   :  { %2252 = vpow2.f32 %v1432_v12  ;;  %v2220_v12 = vpack.c.bf16 %v1641_v30, %v1640_v55 }
 0x36f   :  { %2254 = vpow2.f32 %v1434_v13  ;;  %v1642_v13 = vld [vmem:[%s3490_s6 + $0x60] sm:$0xff] }
 0x370   :  { %2256 = vpow2.f32 %v1436_v31  ;;  %v1643_v31 = vld [vmem:[%s3490_s6 + $0x68] sm:$0xff] }
 0x371   :  { %2258 = vpow2.f32 %v1438_v43  ;;  %v2224_v43 = vpack.c.bf16 %v1643_v31, %v1642_v13 }
 0x372   :  { %2260 = vpow2.f32 %v1402_v47 }
 0x373   :  { %2262 = vpow2.f32 %v1404_v25 }
 0x374   :  { %v2245_v14 = vpop.eup %2244 }
 0x375   :  { %v2247_v56 = vpop.eup %2246  ;;  %v1440_v15 = vsel %vm1370_vm9, %v2245_v14, 0.0 }
 0x376   :  { %v2249_v40 = vpop.eup %2248  ;;  %v1441_v41 = vsel %vm1371_vm11, %v2247_v56, 0.0 }
 0x377   :  { %v2251_v42 = vpop.eup %2250  ;;  %v1452_v50 = vadd.f32 %v1441_v41, %v1440_v15  ;;  %v1442_v45 = vsel %vm1372_vm10, %v2249_v40, 0.0 }
 0x378   :  { %v2253_v33 = vpop.eup %2252  ;;  %v1443_v60 = vsel %vm1373_vm12, %v2251_v42, 0.0 }
 0x379   :  { %v2255_v2 = vpop.eup %2254  ;;  %v1453_v39 = vadd.f32 %v1452_v50, %v1442_v45  ;;  %v1939_v36 = vpack.c.bf16 %v2253_v33, %v2245_v14  ;;  %v1444_v54 = vsel %vm1374_vm13, %v2253_v33, 0.0  ;;  %v1644_v14 = vld [vmem:[%s3490_s6 + $0x70] sm:$0xff] }
 0x37a   :  { %v2257_v58 = vpop.eup %2256  ;;  %v1936_v3 = vpack.c.bf16 %v2255_v2, %v2247_v56  ;;  %v1445_v0 = vsel %vm1375_vm15, %v2255_v2, 0.0  ;;  %v1645_v56 = vld [vmem:[%s3490_s6 + $0x78] sm:$0xff]  ;;  %s2329_s6 = smov [#allocation8]  }
 0x37b   :  { %v2259_v49 = vpop.eup %2258  ;;  %v1454_v51 = vadd.f32 %v1453_v39, %v1443_v60  ;;  %v1945_v7 = vpack.c.bf16 %v2257_v58, %v2249_v40  ;;  %v1457_v9 = vadd.f32 %v1445_v0, %v1444_v54  ;;  %v1446_v44 = vsel %vm1376_vm14, %v2257_v58, 0.0  ;;  %s1755_s28 = sshll.u32 %s2329_s6, 4  ;;  %s1756_s28 = int_to_ptr.vmem [resolvable:$true] %s1755_s28 }
 0x37c   :  { %1937 = vmatprep.mubr.msk.bf16.mxu0 %vm3377_vm2, %v1936_v3  ;;  %v1942_v38 = vpack.c.bf16 %v2259_v49, %v2251_v42  ;;  %v1447_v4 = vsel %vm1377_vm1, %v2259_v49, 0.0  ;;  %v2261_v48 = vpop.eup %2260  ;;  %v2228_v15 = vpack.c.bf16 %v1645_v56, %v1644_v14  ;;  %s2296_s29 = scalar_lea.vmem %s1756_s28, 256  ;;  %p2301_p9 = scmp.lt.s32.totalorder %s1756_s28, %s1756_s28 }
 0x37d   :  { %1455 = vadd.xlane.f32.xlu0 %v1454_v51  ;;  %1940 = vmatmul.mubr.msk.bf16.vlgmr.msra.gmra.mrb[68].mxu0 %vm1938_vm3, %v1939_v36  ;;  %v1458_v34 = vadd.f32 %v1457_v9, %v1446_v44  ;;  %v1450_v8 = vmul.f32 %v2261_v48, %v1448_v26  ;;  %v2263_v27 = vpop.eup %2262  ;;  %p2297_p8 = scmp.ne.s32.totalorder %s1756_s28, %s2296_s29  ;;  %p2302_p10 = scmp.lt.s32.totalorder %s2296_s29, %s2296_s29 }
 0x37e   :  { %1943 = vmatprep.mubr.msk.bf16.mxu1 %vm1941_vm4, %v1942_v38  ;;  %2203 = vmatpush3.bf16.msra.mxu0 %v2200_v18  ;;  %v1451_v28 = vmul.f32 %v2263_v27, %v1449_v10 }
 0x37f   :  { %1946 = vmatmul.mubr.msk.bf16.vlgmr.msra.gmra.mrb[68].mxu1 %vm1944_vm5, %v1945_v7  ;;  %v1459_v16 = vadd.f32 %v1458_v34, %v1447_v4  ;;  %2205 = vmatprep.subr.bf16.mxu0 %v2204_v59  ;;  %p2303_p11 = por %p2302_p10, %p2301_p9 }
 0x381   :  { %1460 = vadd.xlane.f32.xlu1 %v1459_v16  ;;  %p2304_p12 = pnand %p2303_p11, %p2297_p8 }
 0x382   :  { %2207 = vmatpush3.bf16.msra.mxu0 %v2204_v59 }
 0x383   :  { %2209 = vmatprep.subr.bf16.mxu0 %v2208_v5 }
 0x386   :  { %2211 = vmatpush3.bf16.msra.mxu0 %v2208_v5 }
 0x387   :  { %2213 = vmatprep.subr.bf16.mxu0 %v2212_v61 }
 0x38a   :  { %2215 = vmatpush3.bf16.msra.mxu0 %v2212_v61 }
 0x38b   :  { %2217 = vmatprep.subr.bf16.mxu0 %v2216_v24 }
 0x38e   :  { %2219 = vmatpush3.bf16.msra.mxu0 %v2216_v24 }
 0x38f   :  { %2221 = vmatprep.subr.bf16.mxu0 %v2220_v12 }
 0x392   :  { %2223 = vmatpush3.bf16.msra.mxu0 %v2220_v12 }
 0x393   :  { %2225 = vmatprep.subr.bf16.mxu0 %v2224_v43 }
 0x396   :  { %2227 = vmatpush3.bf16.msra.mxu0 %v2224_v43 }
 0x397   :  { %2229 = vmatprep.subr.bf16.mxu0 %v2228_v15 }
 0x39a   :  { %2231 = vmatpush3.bf16.msra.mxu0 %v2228_v15 }
 0x40a   :  { %v1456_v37 = vpop.xlane.xlu0 %1455 }
 0x40b   :  { %v1462_v53 = vadd.f32 %v1456_v37, %v1450_v8 }
 0x40d   :  { %1465 = vst.msk [vmem:[#allocation3] sm:$0xff] %vm46_vm0, %v1462_v53 }
 0x40e   :  { %v1461_v11 = vpop.xlane.xlu1 %1460 }
 0x40f   :  { %v1463_v29 = vadd.f32 %v1461_v11, %v1451_v28 }
 0x411   :  { %1466 = vst.msk [vmem:[#allocation3 + $0x8] sm:$0xff] %vm46_vm0, %v1463_v29 }
 0x414   :  { %v1608_v21 = vld [vmem:[#allocation3] sm:$0xff] }
 0x415   :  { %vm1610_vm6 = vcmp.gt.f32.partialorder %v1608_v21, 0.0 }
 0x416   :  { %v1612_v22 = vsel %vm1610_vm6, %v1608_v21, 1.0 }
 0x417   :  { %1618 = vperm.xlu0 %2243, %v1612_v22  }
 0x418   :  { %v1609_v63 = vld [vmem:[#allocation3 + $0x8] sm:$0xff] }
 0x419   :  { %vm1611_vm7 = vcmp.gt.f32.partialorder %v1609_v63, 0.0 }
 0x41a   :  { %v1613_v35 = vsel %vm1611_vm7, %v1609_v63, 1.0 }
 0x41b   :  { %1623 = vperm.xlu1 %2242, %v1613_v35   ;;  %1471 = vperm.xlu0 %2243, %v2261_v48  }
 0x41f   :  { %1476 = vperm.xlu0 %2243, %v2263_v27  }
 0x450   :  { %v1551_v40 = vpop.f32.mrb[68].mxu0 }
 0x451   :  { %v1553_v41 = vpop.f32.mrb[69].mxu0 }
 0x452   :  { %v1592_v42 = vpop.f32.mrb[68].mxu1  ;;  %v1554_v50 = vpop.f32.mrb[70].mxu0 }
 0x453   :  { %v1593_v33 = vadd.f32 %v1592_v42, %v1551_v40  ;;  %v1594_v45 = vpop.f32.mrb[69].mxu1  ;;  %v1556_v2 = vpop.f32.mrb[71].mxu0 }
 0x454   :  { %v1595_v52 = vpop.f32.mrb[70].mxu1 }
 0x455   :  { %v1596_v39 = vadd.f32 %v1595_v52, %v1554_v50  ;;  %v1597_v36 = vpop.f32.mrb[71].mxu1 }
 0x496   :  { %v1619_v54 = vpop.permute.xlu0 %1618 }
 0x497   :  { %2264 = vrcp.f32 %v1619_v54 }
 0x49a   :  { %v1624_v58 = vpop.permute.xlu1 %1623  ;;  %v1472_v3 = vpop.permute.xlu0 %1471 }
 0x49b   :  { %2266 = vrcp.f32 %v1624_v58  ;;  %v1479_v60 = vmul.f32 0.0, %v1472_v3 }
 0x49d   :  { %v1599_v49 = vadd.f32 %v1593_v33, %v1479_v60 }
 0x49e   :  { %v1477_v0 = vpop.permute.xlu0 %1476 }
 0x49f   :  { %v1480_v51 = vmul.f32 0.0, %v1477_v0 }
 0x4a1   :  { %v2265_v7 = vpop.eup %2264  ;;  %v1600_v38 = vadd.f32 %v1596_v39, %v1480_v51 }
 0x4a2   :  { %v1627_v9 = vmul.f32 %v2265_v7, %v1599_v49 }
 0x4a4   :  { %1997 = vmatprep.mubr.f32.mxu0 %v1627_v9 }
 0x4a5   :  { %v2267_v44 = vpop.eup %2266 }
 0x4a6   :  { %v1629_v34 = vmul.f32 %v2267_v44, %v1600_v38 }
 0x4a8   :  { %1998 = vmatmul.mubr.f32.vlgmr.msra.gmra.mrb[72].mxu0 %v1629_v34 }
 0x57b   :  { %v1999_v4 = vpop.f32.mrb[72].mxu0 }
 0x57c   :  { %v1712_v16 = vpop.f32.mrb[73].mxu0 }
 0x57d   :  { %v1721_v17 = vadd.f32 %v1999_v4, %v1712_v16 }
 0x57f   :  { %v1722_v32 = vrot.slane %v1721_v17, 4 }
 0x581   :  { %v1723_v57 = vadd.f32 %v1722_v32, %v1721_v17 }
 0x583   :  { %v1724_v18 = vrot.slane %v1723_v57, 2 }
 0x585   :  { %v1725_v46 = vadd.f32 %v1724_v18, %v1723_v57 }
 0x587   :  { %v1726_v59 = vrot.slane %v1725_v46, 1 }
 0x589   :  { %v1727_v1 = vadd.f32 %v1726_v59, %v1725_v46 }
 0x58b   :  { %v1729_v19 = vmul.f32 0.0625, %v1727_v1 }
 0x58d   :  { %v1730_v5 = vsub.f32 %v1712_v16, %v1729_v19  ;;  %v1731_v6 = vsub.f32 %v1999_v4, %v1729_v19 }
 0x58f   :  { %v1732_v20 = vmul.f32 %v1730_v5, %v1730_v5  ;;  %v1733_v61 = vmul.f32 %v1731_v6, %v1731_v6 }
 0x591   :  { %v1734_v47 = vadd.f32 %v1733_v61, %v1732_v20 }
 0x593   :  { %v1735_v25 = vrot.slane %v1734_v47, 4 }
 0x595   :  { %v1736_v48 = vadd.f32 %v1735_v25, %v1734_v47 }
 0x597   :  { %v1737_v26 = vrot.slane %v1736_v48, 2 }
 0x599   :  { %v1738_v8 = vadd.f32 %v1737_v26, %v1736_v48 }
 0x59b   :  { %v1739_v27 = vrot.slane %v1738_v8, 1 }
 0x59d   :  { %v1740_v37 = vadd.f32 %v1739_v27, %v1738_v8 }
 0x59f   :  { %v1741_v10 = vmul.f32 0.0625, %v1740_v37 }
 0x5a1   :  { %v1742_v53 = vadd.f32 1e-05, %v1741_v10 }
 0x5a3   :  { %2268 = vrsqrt.f32 %v1742_v53 }
 0x5ad   :  { %v2269_v28 = vpop.eup %2268 }
 0x5ae   :  { %v1744_v11 = vmul.f32 %v2269_v28, %v1730_v5  ;;  %v1745_v29 = vmul.f32 %v2269_v28, %v1731_v6 }
 0x5b0   :  { %2270 = vtanh.f32 %v1744_v11 }
 0x5b1   :  { %2272 = vtanh.f32 %v1745_v29 }
 0x5ba   :  { %v2271_v21 = vpop.eup %2270 }
 0x5bb   :  { %v2273_v22 = vpop.eup %2272  ;;  %1748 = vst [vmem:[#allocation8] sm:$0xff] %v2271_v21 }
 0x5bc   :  { %1749 = vst [vmem:[#allocation8 + $0x8] sm:$0xff] %v2273_v22 }
 0x5bd   :  { %2307 = shalt.err (!%p2304_p12)
}
 0x5be   :  { %s2308_s9 = scalar_lea.hbm %s3491_s7, 256 }
 0x5bf   :  { %p2309_p13 = scmp.ne.s32.totalorder %s3491_s7, %s2308_s9  ;;  %p2312_p0 = scmp.lt.u32.totalorder %s2308_s9, %s3491_s7 }
 0x5c1   :  { %p2314_p1 = pnand %p2312_p0, %p2309_p13 }
 0x5c3   :  { %2317 = shalt.err (!%p2314_p1)
}
 0x5c4   :  { %s2330_s14 = smov 128   ;;  %s2331_s5 = smov 8  }
 0x5c5   :  { %1761 = dma.vmem_to_hbm [thread:$0]  %s1756_s28, 256, %s3491_s7, [#allocation7], %s2330_s14, %s2330_s14, %s2331_s5  }
 0x5c6   :  { %2320 = dma.done.wait [#allocation7], 256  }
 0x5c7   :  { %2321 = vsyncadd [#allocation7], 4294967040 }
 0x5c8   :  { %1765 = vsyncpa [#allocation6], 1 }
 0x5c9   :  { %1766 = vsyncpa [#allocation7], 1 }

</bundles_post_ra>
